<compile_context>
chip_gen: v6e
topology: v6e:2x2x1
jax: 0.10.0
libtpu: 0.0.40
codegen_flags: <defaults>
</compile_context>

<pallas_src>
import jax
import jax.numpy as jnp
from jax.experimental import pallas as pl
from jax.experimental.pallas import tpu as pltpu


def _ae_kernel(x_ref, w1_ref, b1_ref, w2_ref, b2_ref, o_ref):
    # Encoder: h = relu(x @ W1^T + b1).  w1_ref holds W1 pre-transposed to [D_in, H] (bf16).
    # x may already be bf16 (preferred); the astype is a no-op in that case.
    x = x_ref[...].astype(jnp.bfloat16)
    h = jnp.dot(x, w1_ref[...], preferred_element_type=jnp.float32)
    h = jnp.maximum(h + b1_ref[...], 0.0)                      # f32 bias + ReLU (VPU)
    # Decoder: sigmoid(h @ W2^T + b2).  The inner 0.5 of sigmoid(y)=0.5*tanh(0.5*y)+0.5
    # is folded into w2_ref / b2_ref at prep time -> one EUP tanh + one FMA here.
    y = jnp.dot(h.astype(jnp.bfloat16), w2_ref[...],
                preferred_element_type=jnp.float32) + b2_ref[...]
    o_ref[...] = (0.5 * jnp.tanh(y) + 0.5).astype(o_ref.dtype)


def prepare_params(w1, b1, w2=None, b2=None, *, tie_weights=False):
    """One-time parameter prep, OFF the per-call hot path.

    w1: [H, D_in], b1: [H]        (torch.nn.Linear(D_in, H))
    w2: [D_in, H], b2: [D_in]     (torch.nn.Linear(H, D_in)); when tie_weights=True the
                                  decoder reuses W1^T (w2 ignored) and b2 is the free
                                  decoder bias (defaults to zeros if None).
    Weights are pre-transposed to [in, out] and cast to bf16 (MXU inputs, f32 accumulate);
    biases are f32 rows.  The 0.5 of sigmoid(y)=0.5*tanh(0.5*y)+0.5 is folded into the
    decoder weight/bias here (exact power-of-two scale).
    Contract note: bf16 weights/activations into the MXU differ from an all-f32 PyTorch
    forward by bf16 rounding (~1e-2 relative at these scales).
    """
    w1_bf = jnp.asarray(w1, jnp.bfloat16)
    H, D_in = w1_bf.shape
    w1_t = w1_bf.T                                             # [D_in, H]
    if tie_weights:
        w2_t = w1_bf                                           # decoder weight W1^T -> [H, D_in]
        if b2 is None:
            b2 = jnp.zeros((D_in,), jnp.float32)
    else:
        assert w2 is not None and b2 is not None, "untied decoder needs w2 and b2"
        w2_t = jnp.asarray(w2, jnp.bfloat16).T                 # [H, D_in]
    b1_r = jnp.asarray(b1, jnp.float32).reshape(1, -1)
    b2_r = jnp.asarray(b2, jnp.float32).reshape(1, -1)
    # Fold the sigmoid 0.5 (exact: power-of-two scale, also exact in bf16).
    w2_t = (w2_t.astype(jnp.float32) * 0.5).astype(jnp.bfloat16)
    b2_r = b2_r * 0.5
    return w1_t, b1_r, w2_t, b2_r


def _round_up(n, m):
    return ((n + m - 1) // m) * m


def autoencoder_forward(x, params, *, tile_b=256, out_dtype=jnp.float32):
    """x: [B, D_in] (f32 or bf16); params from prepare_params(). Returns [B, D_in] out_dtype.

    tile_b=256 default: amortizes per-grid-step overhead and fills the 256-wide MXU on
    v6e/v7x (128/8 alignment is the floor for v5e).  Use out_dtype=jnp.bfloat16 on
    v5e-class HBM if the consumer tolerates it (halves output bytes, frees the vst slot).
    """
    w1_t, b1_r, w2_t, b2_r = params
    B, D_in = x.shape
    H = w1_t.shape[1]
    assert w1_t.shape == (D_in, H) and w2_t.shape == (H, D_in)
    assert b1_r.shape == (1, H) and b2_r.shape == (1, D_in)

    # Batch tile: multiple of 8 (f32 sublanes), never larger than the 8-rounded batch.
    tile_b = max(8, min(_round_up(tile_b, 8), _round_up(B, 8)))

    x_itemsize = jnp.dtype(x.dtype).itemsize
    out_itemsize = jnp.dtype(out_dtype).itemsize

    def vmem_estimate(tb):
        weights = 2 * D_in * H * 2                             # resident bf16 W1^T + W2^T
        biases = (H + D_in) * 4
        io = 2 * tb * D_in * (x_itemsize + out_itemsize)       # double-buffered x / out tiles
        act = tb * H * 4 + tb * D_in * 4                       # f32 hidden + pre-sigmoid temps
        return weights + biases + io + act

    # Keep the resident-weight scheme under ~48 MiB (v7x physical VMEM is 64 MiB);
    # shrink tile_b first.
    # TODO(synk): once the weights ALONE exceed ~32 MiB, add a K grid axis with an f32
    # acc scratch (pl.when init/finalize) instead of keeping both weights resident.
    while vmem_estimate(tile_b) > 48 * 2**20 and tile_b > 8:
        tile_b = max(8, tile_b // 2)

    n_tiles = pl.cdiv(B, tile_b)
    b_pad = n_tiles * tile_b
    x_in = jnp.pad(x, ((0, b_pad - B), (0, 0))) if b_pad != B else x

    def const_spec(shape):
        # Constant index_map: block never changes; Buffered(1) keeps a single resident
        # VMEM copy (DMA'd once) instead of a pointless double buffer.
        return pl.BlockSpec(shape, lambda i: (0, 0), pipeline_mode=pl.Buffered(1))

    cost = pl.CostEstimate(
        flops=4 * b_pad * D_in * H,                            # two matmuls
        transcendentals=b_pad * D_in,                          # one tanh per output element
        bytes_accessed=(b_pad * D_in * (x_itemsize + out_itemsize)
                        + 2 * D_in * H * 2 + (H + D_in) * 4),
    )

    vmem_limit = int(min(max(2 * vmem_estimate(tile_b), 32 * 2**20), 96 * 2**20))

    out = pl.pallas_call(
        _ae_kernel,
        out_shape=jax.ShapeDtypeStruct((b_pad, D_in), out_dtype),
        grid=(n_tiles,),
        in_specs=[
            pl.BlockSpec((tile_b, D_in), lambda i: (i, 0)),    # x tile (double-buffered)
            const_spec((D_in, H)),                             # W1^T (bf16, resident)
            const_spec((1, H)),                                # b1 (f32)
            const_spec((H, D_in)),                             # 0.5*W2^T (bf16, resident)
            const_spec((1, D_in)),                             # 0.5*b2 (f32)
        ],
        out_specs=pl.BlockSpec((tile_b, D_in), lambda i: (i, 0)),
        compiler_params=pltpu.CompilerParams(
            # "parallel" lets the runtime megacore-shard the batch axis.  On v7x, if a
            # profile shows one TensorCore idle, switch this to pltpu.CORE_PARALLEL.
            dimension_semantics=("parallel",),
            vmem_limit_bytes=vmem_limit,
        ),
        cost_estimate=cost,
    )(x_in, w1_t, b1_r, w2_t, b2_r)
    return out[:B] if b_pad != B else out


if __name__ == "__main__":
    # Small, layout-friendly demo: 128-aligned feature dims (lane-dense stores, full MXU
    # tiles); B=512 so the default tile_b=256 still yields a multi-step "parallel" grid.
    # NOTE: at this size the kernel is launch/DMA-overhead bound; tile-size conclusions
    # only transfer at realistic batch sizes.
    B, D_in, H = 512, 256, 128

    key = jax.random.PRNGKey(0)
    kx, kw1, kb1, kw2, kb2, kb2t = jax.random.split(key, 6)
    x = jax.random.normal(kx, (B, D_in), dtype=jnp.float32)
    # Same parameter shapes as torch.nn.Linear(D_in, H) / Linear(H, D_in).
    w1 = jax.random.normal(kw1, (H, D_in), dtype=jnp.float32) * 0.1
    b1 = jax.random.normal(kb1, (H,), dtype=jnp.float32) * 0.1
    w2 = jax.random.normal(kw2, (D_in, H), dtype=jnp.float32) * 0.1
    b2 = jax.random.normal(kb2, (D_in,), dtype=jnp.float32) * 0.1
    b2_tied = jax.random.normal(kb2t, (D_in,), dtype=jnp.float32) * 0.1

    # ---- untied weights (encoder Linear+ReLU, decoder Linear+Sigmoid) ----
    params = prepare_params(w1, b1, w2, b2, tie_weights=False)     # one-time, off hot path
    out = jax.block_until_ready(autoencoder_forward(x, params, tile_b=256))
    assert out.shape == (B, D_in) and out.dtype == jnp.float32

    # Reference 1: identical math in plain JAX (bf16 MXU inputs, f32 accum/elementwise).
    w1_t, b1_r, w2_t, b2_r = params
    h_ref = jnp.maximum(
        jnp.dot(x.astype(jnp.bfloat16), w1_t, preferred_element_type=jnp.float32) + b1_r,
        0.0)
    y_ref = jnp.dot(h_ref.astype(jnp.bfloat16), w2_t,
                    preferred_element_type=jnp.float32) + b2_r
    ref_same = 0.5 * jnp.tanh(y_ref) + 0.5
    assert jnp.allclose(out, ref_same, atol=1e-4, rtol=1e-4), "mismatch vs same-math ref"

    # Reference 2: exact f32 PyTorch-equivalent math (differs only by bf16 MXU rounding).
    ref_f32 = jax.nn.sigmoid(jnp.maximum(x @ w1.T + b1, 0.0) @ w2.T + b2)
    assert jnp.allclose(out, ref_f32, atol=3e-2), "mismatch vs f32 reference"

    # ---- tied weights (decoder reuses W1^T with free bias b2_tied) ----
    params_t = prepare_params(w1, b1, b2=b2_tied, tie_weights=True)
    out_t = jax.block_until_ready(autoencoder_forward(x, params_t, tile_b=256))
    ref_t = jax.nn.sigmoid(jnp.maximum(x @ w1.T + b1, 0.0) @ w1 + b2_tied)
    assert jnp.allclose(out_t, ref_t, atol=3e-2), "mismatch vs tied-weight f32 reference"

    # ---- ragged batch + bf16 producer path (no wrapper cast needed in real pipelines) ----
    out_r = jax.block_until_ready(
        autoencoder_forward(x[:77].astype(jnp.bfloat16), params, tile_b=256))
    assert out_r.shape == (77, D_in)

    print("KERNEL_OK")
</pallas_src>

<mosaic_0001>
module attributes {stable_mosaic.version = 11 : i64} {
  func.func @_ae_kernel(%arg0: i32, %arg1: memref<256x256xf32, #tpu.memory_space<vmem>>, %arg2: memref<256x128xbf16, #tpu.memory_space<vmem>>, %arg3: memref<1x128xf32, #tpu.memory_space<vmem>>, %arg4: memref<128x256xbf16, #tpu.memory_space<vmem>>, %arg5: memref<1x256xf32, #tpu.memory_space<vmem>>, %arg6: memref<256x256xf32, #tpu.memory_space<vmem>>) attributes {dimension_semantics = [#tpu.dimension_semantics<parallel>], iteration_bounds = array<i64: 2>, scalar_prefetch = 0 : i64, scratch_operands = 0 : i64, tpu.core_type = #tpu.core_type<tc>, window_params = [{transform_indices = @transform_0, window_bounds = array<i64: 256, 256>}, {pipeline_mode = #tpu.pipeline_mode<synchronous>, transform_indices = @transform_1, window_bounds = array<i64: 256, 128>}, {pipeline_mode = #tpu.pipeline_mode<synchronous>, transform_indices = @transform_2, window_bounds = array<i64: 1, 128>}, {pipeline_mode = #tpu.pipeline_mode<synchronous>, transform_indices = @transform_3, window_bounds = array<i64: 128, 256>}, {pipeline_mode = #tpu.pipeline_mode<synchronous>, transform_indices = @transform_4, window_bounds = array<i64: 1, 256>}, {transform_indices = @transform_5, window_bounds = array<i64: 256, 256>}]} {
    %c0 = arith.constant 0 : index
    %c0_0 = arith.constant 0 : index
    %0 = vector.load %arg1[%c0, %c0_0] : memref<256x256xf32, #tpu.memory_space<vmem>>, vector<256x256xf32>
    %1 = arith.truncf %0 : vector<256x256xf32> to vector<256x256xbf16>
    %c0_1 = arith.constant 0 : index
    %c0_2 = arith.constant 0 : index
    %2 = vector.load %arg2[%c0_1, %c0_2] : memref<256x128xbf16, #tpu.memory_space<vmem>>, vector<256x128xbf16>
    %cst = arith.constant dense<0.000000e+00> : vector<256x128xf32>
    %3 = tpu.matmul %1, %2, %cst {dimension_numbers = #tpu.dot_dimension_numbers<[1], [0], [0], [1], [0, 0, 1, 1], [], []>} : vector<256x256xbf16>, vector<256x128xbf16>, vector<256x128xf32> -> vector<256x128xf32>
    %c0_3 = arith.constant 0 : index
    %c0_4 = arith.constant 0 : index
    %4 = vector.load %arg3[%c0_3, %c0_4] : memref<1x128xf32, #tpu.memory_space<vmem>>, vector<1x128xf32>
    %5 = vector.broadcast %4 : vector<1x128xf32> to vector<256x128xf32>
    %6 = arith.addf %3, %5 : vector<256x128xf32>
    %cst_5 = arith.constant 0.000000e+00 : f32
    %7 = vector.broadcast %cst_5 : f32 to vector<256x128xf32>
    %8 = arith.maximumf %6, %7 : vector<256x128xf32>
    %9 = arith.truncf %8 : vector<256x128xf32> to vector<256x128xbf16>
    %c0_6 = arith.constant 0 : index
    %c0_7 = arith.constant 0 : index
    %10 = vector.load %arg4[%c0_6, %c0_7] : memref<128x256xbf16, #tpu.memory_space<vmem>>, vector<128x256xbf16>
    %cst_8 = arith.constant dense<0.000000e+00> : vector<256x256xf32>
    %11 = tpu.matmul %9, %10, %cst_8 {dimension_numbers = #tpu.dot_dimension_numbers<[1], [0], [0], [1], [0, 0, 1, 1], [], []>} : vector<256x128xbf16>, vector<128x256xbf16>, vector<256x256xf32> -> vector<256x256xf32>
    %c0_9 = arith.constant 0 : index
    %c0_10 = arith.constant 0 : index
    %12 = vector.load %arg5[%c0_9, %c0_10] : memref<1x256xf32, #tpu.memory_space<vmem>>, vector<1x256xf32>
    %13 = vector.broadcast %12 : vector<1x256xf32> to vector<256x256xf32>
    %14 = arith.addf %11, %13 : vector<256x256xf32>
    %15 = math.tanh %14 : vector<256x256xf32>
    %cst_11 = arith.constant 5.000000e-01 : f32
    %16 = vector.broadcast %cst_11 : f32 to vector<256x256xf32>
    %17 = arith.mulf %16, %15 : vector<256x256xf32>
    %cst_12 = arith.constant 5.000000e-01 : f32
    %18 = vector.broadcast %cst_12 : f32 to vector<256x256xf32>
    %19 = arith.addf %17, %18 : vector<256x256xf32>
    %c0_13 = arith.constant 0 : index
    %c0_14 = arith.constant 0 : index
    %20 = vector.load %arg6[%c0_13, %c0_14] : memref<256x256xf32, #tpu.memory_space<vmem>>, vector<256x256xf32>
    tpu.vector_store %arg6[%c0_13, %c0_14], %19 {strides = array<i32>} : memref<256x256xf32, #tpu.memory_space<vmem>>, vector<256x256xf32>,
    return
  }
  func.func @transform_0(%arg0: i32) -> (i32, i32) {
    %c0_i32 = arith.constant 0 : i32
    %c0_i32_0 = arith.constant 0 : i32
    return %arg0, %c0_i32 : i32, i32
  }
  func.func @transform_1(%arg0: i32) -> (i32, i32) {
    %c0_i32 = arith.constant 0 : i32
    %c0_i32_0 = arith.constant 0 : i32
    %c0_i32_1 = arith.constant 0 : i32
    return %c0_i32, %c0_i32_0 : i32, i32
  }
  func.func @transform_2(%arg0: i32) -> (i32, i32) {
    %c0_i32 = arith.constant 0 : i32
    %c0_i32_0 = arith.constant 0 : i32
    %c0_i32_1 = arith.constant 0 : i32
    return %c0_i32, %c0_i32_0 : i32, i32
  }
  func.func @transform_3(%arg0: i32) -> (i32, i32) {
    %c0_i32 = arith.constant 0 : i32
    %c0_i32_0 = arith.constant 0 : i32
    %c0_i32_1 = arith.constant 0 : i32
    return %c0_i32, %c0_i32_0 : i32, i32
  }
  func.func @transform_4(%arg0: i32) -> (i32, i32) {
    %c0_i32 = arith.constant 0 : i32
    %c0_i32_0 = arith.constant 0 : i32
    %c0_i32_1 = arith.constant 0 : i32
    return %c0_i32, %c0_i32_0 : i32, i32
  }
  func.func @transform_5(%arg0: i32) -> (i32, i32) {
    %c0_i32 = arith.constant 0 : i32
    %c0_i32_0 = arith.constant 0 : i32
    return %arg0, %c0_i32 : i32, i32
  }
}

</mosaic_0001>

<bundles_post_ra>
// kernel: tpu_custom_call.1
= control target key start
LH: loop header
LB: loop body
LE: loop exit
PB: predicated region body
PF: predicated region fallthrough
CT: control target
= control target key end

     0   :  { %10 = vsyncpa [#allocation3], 0  ;;  %s2435_s0 = inlined_call_operand.hbm [shape: f32[512,256], index: 0, kind: input, shape index: {}]   ;;  %s2436_s1 = inlined_call_operand.hbm [shape: bf16[256,128], index: 1, kind: input, shape index: {}]   ;;  %s2437_s2 = inlined_call_operand.vmem [shape: f32[1,128], index: 2, kind: input, shape index: {}]   ;;  %s2438_s3 = inlined_call_operand.hbm [shape: bf16[128,256], index: 3, kind: input, shape index: {}]   ;;  %s2439_s4 = inlined_call_operand.vmem [shape: f32[1,256], index: 4, kind: input, shape index: {}]   ;;  %s2440_s5 = inlined_call_operand.hbm [shape: f32[512,256], index: 5, kind: output, shape index: {}]  }
   0x1   :  { %12 = vsyncpa [#allocation3 + $0x1], 0 }
   0x2   :  { %13 = vsyncpa [#allocation6], 0 }
   0x3   :  { %14 = vsyncpa [#allocation4], 0 }
   0x4   :  { %16 = vsyncpa [#allocation4 + $0x1], 0  ;;  %s1986_s18 = smov 0   ;;  %s1988_s19 = smov 0  }
   0x5   :  { %s1990_s20 = smov 0   ;;  %s1992_s21 = smov 0  }
   0x6 LB: > { %s2007_s22 = sadd.s32 4294967295, %s1941_s21   ;;  %s1380_s23 = sadd.s32 4294967294, %s1941_s21   ;;  %s1941_s21 = sphi %s1992_s21, %s2462_s21   ;;  %s1937_s20 = sphi %s1990_s20, %s2461_s20   ;;  %s1933_s19 = sphi %s1988_s19, %s2460_s19   ;;  %s1929_s18 = sphi %s1986_s18, %s2459_s18  }
   0x7   : > { %p42_p0 = scmp.ne.s32.totalorder %s1933_s19, %s1929_s18  ;;  %p2441_p1 = scmp.eq.s32.totalorder %s2007_s22, 0 }
   0x8   : > { %p156_p3 = scmp.eq.s32.totalorder %s1380_s23, 1  ;;  %p1381_p5 = scmp.ge.s32.totalorder %s1941_s21, 1 }
   0x9   : > { %p2016_p4 = por %p2441_p1, %p42_p0  ;;  %p163_p7 = scmp.lt.s32.totalorder %s1941_s21, 3 }
   0xa   : > { %p2021_p6 = por %p156_p3, %p42_p0  ;;  %s1943_s27 = smov [#allocation5]  }
   0xb   : > { %s2445_s24 = scalar_select %p2016_p4, 1, 0 }
   0xc   : > { %s2446_s25 = scalar_select %p2021_p6, 1, 0 }
   0xd   : > { %p2026_p8 = pnand %p1381_p5, %p163_p7  ;;  %s175_s28 = sshll.u32 %s1943_s27, 4  ;;  %s176_s28 = int_to_ptr.vmem [resolvable:$true] %s175_s28 }
   0xe   : > { %s1944_s30 = smov [#allocation7]   ;;  %s1804_s7 = scalar_lea.vmem %s176_s28, 2048 }
   0xf   : > { %s2447_s26 = scalar_select %p2026_p8, 1, 0 }
  0x10   : > { %p1561_p9 = pneg %p2026_p8  ;;  %s191_s6 = sshll.u32 %s1944_s30, 4  ;;  %s192_s6 = int_to_ptr.vmem [resolvable:$true] %s191_s6 }
  0x11   : > { %p1805_p13 = scmp.ne.s32.totalorder %s176_s28, %s1804_s7  ;;  %p1812_p5 = scmp.lt.s32.totalorder %s176_s28, %s176_s28 }
  0x12   : > { %p2035_p11 = pnand %p1561_p9, %p2441_p1  ;;  %p1813_p7 = scmp.lt.s32.totalorder %s1804_s7, %s1804_s7 }
  0x14   : > { %p1795_p12 = pneg %p2035_p11  ;;  %p1814_p10 = por %p1813_p7, %p1812_p5 }
  0x16   : > { %p1807_p0 = pnand %p1805_p13, %p1795_p12 }
  0x18   : > { %p1808_p3 = pneg %p1807_p0 }
  0x1a   : > { %p1815_p9 = pnand %p1814_p10, %p1808_p3 }
  0x1c   : > { %1818 = shalt.err (!%p1815_p9)
}
  0x1d   : > { %s1945_s8 = smov 64   ;;  %s1946_s9 = smov 4  }
  0x1e   : > { %1564 = dma.hbm_to_vmem [thread:$0]  (!%p2035_p11), %s2436_s1, 2048, %s176_s28, [#allocation6], %s1945_s8, %s1945_s8, %s1946_s9  }
  0x1f   : > { %s1830_s12 = scalar_lea.vmem %s192_s6, 2048  ;;  %p1838_p2 = scmp.lt.s32.totalorder %s192_s6, %s192_s6 }
  0x20   : > { %p1831_p1 = scmp.ne.s32.totalorder %s192_s6, %s1830_s12  ;;  %p1839_p6 = scmp.lt.s32.totalorder %s1830_s12, %s1830_s12 }
  0x22   : > { %p1833_p13 = pnand %p1831_p1, %p1795_p12  ;;  %p1840_p5 = por %p1839_p6, %p1838_p2 }
  0x24   : > { %p1834_p0 = pneg %p1833_p13 }
  0x26   : > { %p1841_p10 = pnand %p1840_p5, %p1834_p0 }
  0x28   : > { %1844 = shalt.err (!%p1841_p10)
}
  0x29   : > { %s1947_s13 = smov 128   ;;  %s1948_s14 = smov 8  }
  0x2a   : > { %1567 = dma.hbm_to_vmem [thread:$0]  (!%p2035_p11), %s2438_s3, 2048, %s192_s6, [#allocation6], %s1947_s13, %s1947_s13, %s1948_s14  }
  0x2b   : > { %s2058_s17 = sadd.s32 1, %s1941_s21   ;;  %s29_s27 = sadd.s32 1, %s1937_s20 }
  0x2c   : > { %s26_s23 = ssub.s32 %s1941_s21, %s2058_s17  ;;  %p36_p2 = scmp.ne.s32.totalorder %s1937_s20, %s1933_s19 }
  0x2d   : > { %p27_p1 = scmp.eq.s32.totalorder %s26_s23, 0  ;;  %p37_p6 = scmp.eq.s32.totalorder %s1941_s21, 0 }
  0x2e   : > { %p2449_p3 = scmp.eq.s32.totalorder %s2007_s22, 1  ;;  %p1578_p9 = scmp.lt.s32.totalorder %s1941_s21, 2 }
  0x2f   : > { %s2067_s28 = scalar_select %p27_p1, %s1937_s20, %s29_s27  }
  0x30   : > { %p38_p12 = por %p37_p6, %p36_p2  ;;  %p2071_p7 = por %p2449_p3, %p36_p2 }
  0x31   : > { %s208_s29 = sand.u32 1, %s1937_s20   ;;  %s1434_s6 = sshll.u32 %s1941_s21, 13 }
  0x32   : > { %s2450_s30 = scalar_select %p2071_p7, 1, 0 }
  0x33   : > { %s1385_s7 = sshll.u32 %s208_s29, 9  ;;  %s2081_s10 = scalar_lea.hbm %s2435_s0, %s1434_s6 }
  0x34   : > { %s212_s11 = scalar_lea.vmem [#allocation2], %s1385_s7  ;;  %p2085_p11 = pnand %p1578_p9, %p38_p12 }
  0x35   : > { %s220_s12 = sshll.u32 %s212_s11, 4  ;;  %s2089_s14 = scalar_lea.sflag [#allocation3], %s208_s29  ;;  %s2083_s12 = int_to_ptr.vmem [resolvable:$true] %s220_s12 }
  0x36   : > { %s1845_s15 = scalar_lea.hbm %s2081_s10, 8192  ;;  %p1847_p0 = pneg %p2085_p11 }
  0x37   : > { %p1846_p13 = scmp.ne.s32.totalorder %s2081_s10, %s1845_s15  ;;  %s1850_s27 = scalar_lea.hbm %s2435_s0, 16384 }
  0x38   : > { %p1851_p1 = scmp.lt.s32.totalorder %s2081_s10, %s2435_s0  ;;  %p1852_p2 = scmp.lt.s32.totalorder %s1850_s27, %s1845_s15 }
  0x39   : > { %p1848_p5 = pnand %p1847_p0, %p1846_p13 }
  0x3a   : > { %p1853_p6 = por %p1852_p2, %p1851_p1 }
  0x3b   : > { %p1849_p10 = pneg %p1848_p5 }
  0x3d   : > { %p1854_p12 = pnand %p1853_p6, %p1849_p10 }
  0x3f   : > { %1857 = shalt.err (!%p1854_p12)
}
  0x40   : > { %s1858_s29 = scalar_lea.vmem %s2083_s12, 8192  ;;  %s1949_s8 = smov [#allocation2]  }
  0x41   : > { %p1859_p3 = scmp.ne.s32.totalorder %s2083_s12, %s1858_s29  ;;  %s1863_s9 = sshll.u32 %s1949_s8, 4  ;;  %s1864_s9 = int_to_ptr.vmem [resolvable:$false] %s1863_s9 }
  0x42   : > { %s1865_s11 = scalar_lea.vmem %s1864_s9, 16384  ;;  %p1866_p5 = scmp.lt.s32.totalorder %s2083_s12, %s1864_s9 }
  0x43   : > { %p1861_p9 = pnand %p1859_p3, %p1847_p0  ;;  %p1867_p7 = scmp.lt.s32.totalorder %s1865_s11, %s1858_s29 }
  0x45   : > { %p1862_p13 = pneg %p1861_p9  ;;  %p1868_p4 = por %p1867_p7, %p1866_p5 }
  0x47   : > { %p1869_p8 = pnand %p1868_p4, %p1862_p13 }
  0x49   : > { %1872 = shalt.err (!%p1869_p8)
}
  0x4a   : > { %s1950_s15 = smov 256   ;;  %s1951_s16 = smov 16  }
  0x4b   : > { %1571 = dma.hbm_to_vmem [thread:$0]  (!%p2085_p11), %s2081_s10, 8192, %s2083_s12, %s2089_s14, %s1950_s15, %s1950_s15, %s1951_s16  }
  0x4c   : > { %p2452_p0 = scmp.ne.s32.totalorder %s2447_s26, 0 }
  0x4d   : > { %s2113_s23 = sand.u32 (!%p2452_p0), 1, %s1933_s19   ;;  %p2453_p4 = scmp.ne.s32.totalorder (!%p2452_p0), %s2445_s24, 0 }
  0x4e   : > { %232 = sbr.rel (%p2452_p0) target bundleno = 680 (0x2a8), region = 40  ;;  %s1390_s27 = sshll.u32 (!%p2452_p0), %s2113_s23, 9 }
  0x4f   : > { %s235_s7 = scalar_lea.sflag (!%p2452_p0), [#allocation3], %s2113_s23  ;;  %s2119_s6 = scalar_lea.vmem (!%p2452_p0), [#allocation2], %s1390_s27 }
  0x53   : > { %1916 = dma.done.wait (%p2453_p4), %s235_s7, 8192  }
  0x54   : > { %1918 = vsyncadd (%p2453_p4), %s235_s7, 4294959104  ;;  %p2454_p8 = scmp.eq.s32.totalorder %s2007_s22, 0 }
  0x56   : > { %1920 = dma.done.wait (%p2454_p8), [#allocation6], 4096   ;;  %p2455_p7 = pmov %p2454_p8 }
  0x57   : > { %v1625_v0 = vld [vmem:[#allocation5 + $0x78] sm:$0xff]   ;;  %v1627_v2 = vld [vmem:[#allocation5 + $0x70] sm:$0xff]   ;;  %v1629_v4 = vld [vmem:[#allocation5 + $0x68] sm:$0xff]   ;;  %s2265_s13 = scalar_lea.vmem [#allocation8], %s1390_s27  ;;  %s1436_s14 = sshll.u32 %s2007_s22, 13 }
  0x58   : > { %1922 = vsyncadd (%p2455_p7), [#allocation6], 4294963200  ;;  %v1626_v1 = vld [vmem:[#allocation5 + $0x38] sm:$0xff]   ;;  %1437 = vmatprep.subr.bf16.mxu0 %v1625_v0  ;;  %v1628_v3 = vld [vmem:[#allocation5 + $0x30] sm:$0xff]   ;;  %s1288_s29 = sshll.u32 %s2265_s13, 4  ;;  %s2388_s11 = scalar_lea.hbm %s2440_s5, %s1436_s14  ;;  %s2390_s29 = int_to_ptr.vmem [resolvable:$true] %s1288_s29 }
  0x59   : > { %1438 = vmatpush3.bf16.msra.mxu0 %v1626_v1  ;;  %v1630_v5 = vld [vmem:[#allocation5 + $0x28] sm:$0xff]   ;;  %v1631_v6 = vld [vmem:[#allocation5 + $0x60] sm:$0xff]   ;;  %v1633_v8 = vld [vmem:[#allocation5 + $0x58] sm:$0xff]   ;;  %s1274_s15 = scalar_lea.sflag [#allocation4], %s2113_s23  ;;  %s1873_s22 = scalar_lea.vmem %s2390_s29, 8192 }
  0x5a   : > { %1439 = vmatprep.subr.bf16.mxu0 %v1627_v2  ;;  %v1632_v7 = vld [vmem:[#allocation5 + $0x20] sm:$0xff]   ;;  %v1634_v9 = vld [vmem:[#allocation5 + $0x18] sm:$0xff]   ;;  %v1635_v10 = vld [vmem:[#allocation5 + $0x50] sm:$0xff]   ;;  %p1874_p11 = scmp.ne.s32.totalorder %s2390_s29, %s1873_s22  ;;  %p2456_p10 = scmp.ne.s32.totalorder %s2450_s30, 0 }
  0x5b   : > { %v277_v11 = vld [vmem:[%s2119_s6 + $0x8] sm:$0xff]  ;;  %v279_v12 = vld [vmem:[%s2119_s6 + $0x18] sm:$0xff]  ;;  %v1636_v14 = vld [vmem:[#allocation5 + $0x10] sm:$0xff]   ;;  %s1953_s16 = smov [#allocation8]  }
  0x5c   : > { %v341_v13 = vpack.c.bf16 %v279_v12, %v277_v11  ;;  %v1637_v15 = vld [vmem:[#allocation5 + $0x48] sm:$0xff]   ;;  %v1639_v17 = vld [vmem:[#allocation5 + $0x40] sm:$0xff]   ;;  %v278_v20 = vld [vmem:[%s2119_s6 + $0x10] sm:$0xff]  ;;  %p1875_p1 = pnand %p1874_p11, %p2456_p10  ;;  %s1877_s27 = sshll.u32 %s1953_s16, 4  ;;  %s1878_s27 = int_to_ptr.vmem [resolvable:$false] %s1877_s27 }
  0x5d   : > { %1440 = vmatpush3.bf16.msra.mxu0 %v1628_v3  ;;  %v1638_v16 = vld [vmem:[#allocation5 + $0x8] sm:$0xff]   ;;  %v1640_v18 = vld [vmem:[#allocation5] sm:$0xff]   ;;  %v283_v22 = vld [vmem:[%s2119_s6 + $0x38] sm:$0xff]  ;;  %s1879_s7 = scalar_lea.vmem %s1878_s27, 16384  ;;  %p1880_p6 = scmp.lt.s32.totalorder %s2390_s29, %s1878_s27 }
  0x5e   : > { %1441 = vmatprep.subr.bf16.mxu0 %v1629_v4  ;;  %539 = vmatprep.mubr.bf16.mxu0 %v341_v13  ;;  %v276_v19 = vld [vmem:[%s2119_s6] sm:$0xff]  ;;  %v281_v21 = vld [vmem:[%s2119_s6 + $0x28] sm:$0xff]  ;;  %v282_v26 = vld [vmem:[%s2119_s6 + $0x30] sm:$0xff]  ;;  %p1876_p2 = pneg %p1875_p1  ;;  %p1881_p12 = scmp.lt.s32.totalorder %s1879_s7, %s1873_s22 }
  0x5f   : > { %v340_v23 = vpack.c.bf16 %v278_v20, %v276_v19  ;;  %v343_v24 = vpack.c.bf16 %v283_v22, %v281_v21  ;;  %v280_v25 = vld [vmem:[%s2119_s6 + $0x20] sm:$0xff]  ;;  %v285_v27 = vld [vmem:[%s2119_s6 + $0x48] sm:$0xff]  ;;  %v287_v28 = vld [vmem:[%s2119_s6 + $0x58] sm:$0xff] }
  0x60   : > { %v342_v29 = vpack.c.bf16 %v282_v26, %v280_v25  ;;  %v1641_v30 = vld [vmem:[#allocation7 + $0x74] ss:$8 sps:$4 sm:$0xff]   ;;  %v1643_v31 = vld [vmem:[#allocation7 + $0x70] ss:$8 sps:$4 sm:$0xff]   ;;  %v345_v32 = vpack.c.bf16 %v287_v28, %v285_v27  ;;  %v1644_v33 = vld [vmem:[#allocation7 + $0x64] ss:$8 sps:$4 sm:$0xff]   ;;  %p1882_p3 = por %p1881_p12, %p1880_p6 }
  0x61   : > { %1442 = vmatpush3.bf16.msra.mxu0 %v1630_v5  ;;  %824 = vmatprep.subr.bf16.mxu1 %v1641_v30  ;;  %v284_v34 = vld [vmem:[%s2119_s6 + $0x40] sm:$0xff]  ;;  %v286_v35 = vld [vmem:[%s2119_s6 + $0x50] sm:$0xff]  ;;  %v289_v37 = vld [vmem:[%s2119_s6 + $0x68] sm:$0xff] }
  0x62   : > { %1443 = vmatprep.subr.bf16.mxu0 %v1631_v6  ;;  %825 = vmatpush1.bf16.msra.mxu1 %v1643_v31  ;;  %v1646_v36 = vld [vmem:[#allocation7 + $0x60] ss:$8 sps:$4 sm:$0xff]   ;;  %v1647_v38 = vld [vmem:[#allocation7 + $0x54] ss:$8 sps:$4 sm:$0xff]   ;;  %v1649_v40 = vld [vmem:[#allocation7 + $0x50] ss:$8 sps:$4 sm:$0xff]   ;;  %v344_v41 = vpack.c.bf16 %v286_v35, %v284_v34  ;;  %p1883_p9 = pnand %p1882_p3, %p1876_p2 }
  0x63   : > { %826 = vmatprep.subr.bf16.mxu1 %v1644_v33  ;;  %v291_v39 = vld [vmem:[%s2119_s6 + $0x78] sm:$0xff]  ;;  %v1650_v42 = vld [vmem:[#allocation7 + $0x44] ss:$8 sps:$4 sm:$0xff]   ;;  %v1652_v44 = vld [vmem:[#allocation7 + $0x40] ss:$8 sps:$4 sm:$0xff]  }
  0x64   : > { %v347_v43 = vpack.c.bf16 %v291_v39, %v289_v37  ;;  %v1653_v45 = vld [vmem:[#allocation7 + $0x34] ss:$8 sps:$4 sm:$0xff]   ;;  %v288_v46 = vld [vmem:[%s2119_s6 + $0x60] sm:$0xff]  ;;  %v293_v48 = vld [vmem:[%s2119_s6 + $0x88] sm:$0xff]  ;;  %v1952_v37 = vmov 0  }
  0x65   : > { %1444 = vmatpush3.bf16.msra.mxu0 %v1632_v7  ;;  %v290_v47 = vld [vmem:[%s2119_s6 + $0x70] sm:$0xff]  ;;  %v295_v49 = vld [vmem:[%s2119_s6 + $0x98] sm:$0xff]  ;;  %v292_v52 = vld [vmem:[%s2119_s6 + $0x80] sm:$0xff]  ;;  %856 = vmatprep.mubr.bf16.mxu1 %v1952_v37 }
  0x66   : > { %1445 = vmatprep.subr.bf16.mxu0 %v1633_v8  ;;  %827 = vmatpush1.bf16.msra.mxu1 %v1646_v36  ;;  %v346_v50 = vpack.c.bf16 %v290_v47, %v288_v46  ;;  %v349_v51 = vpack.c.bf16 %v295_v49, %v293_v48  ;;  %v294_v53 = vld [vmem:[%s2119_s6 + $0x90] sm:$0xff]  ;;  %v297_v54 = vld [vmem:[%s2119_s6 + $0xa8] sm:$0xff]  ;;  %v299_v55 = vld [vmem:[%s2119_s6 + $0xb8] sm:$0xff] }
  0x67   : > { %828 = vmatprep.subr.bf16.mxu1 %v1647_v38  ;;  %v348_v56 = vpack.c.bf16 %v294_v53, %v292_v52  ;;  %v351_v57 = vpack.c.bf16 %v299_v55, %v297_v54  ;;  %v296_v58 = vld [vmem:[%s2119_s6 + $0xa0] sm:$0xff]  ;;  %v298_v59 = vld [vmem:[%s2119_s6 + $0xb0] sm:$0xff]  ;;  %v301_v60 = vld [vmem:[%s2119_s6 + $0xc8] sm:$0xff] }
  0x68   : > { %v303_v61 = vld [vmem:[%s2119_s6 + $0xd8] sm:$0xff]  ;;  %v350_v62 = vpack.c.bf16 %v298_v59, %v296_v58  ;;  %v300_v0 = vld [vmem:[%s2119_s6 + $0xc0] sm:$0xff]  ;;  %v302_v1 = vld [vmem:[%s2119_s6 + $0xd0] sm:$0xff] }
  0x69   : > { %1446 = vmatpush3.bf16.msra.mxu0 %v1634_v9  ;;  %v353_v63 = vpack.c.bf16 %v303_v61, %v301_v60  ;;  %v305_v2 = vld [vmem:[%s2119_s6 + $0xe8] sm:$0xff]  ;;  %v307_v3 = vld [vmem:[%s2119_s6 + $0xf8] sm:$0xff]  ;;  %v352_v4 = vpack.c.bf16 %v302_v1, %v300_v0  ;;  %v304_v6 = vld [vmem:[%s2119_s6 + $0xe0] sm:$0xff] }
  0x6a   : > { %1447 = vmatprep.subr.bf16.mxu0 %v1635_v10  ;;  %829 = vmatpush1.bf16.msra.mxu1 %v1649_v40  ;;  %v355_v5 = vpack.c.bf16 %v307_v3, %v305_v2  ;;  %v306_v7 = vld [vmem:[%s2119_s6 + $0xf0] sm:$0xff]  ;;  %v309_v8 = vld [vmem:[%s2119_s6 + $0x108] sm:$0xff]  ;;  %v311_v9 = vld [vmem:[%s2119_s6 + $0x118] sm:$0xff] }
  0x6b   : > { %830 = vmatprep.subr.bf16.mxu1 %v1650_v42  ;;  %v354_v10 = vpack.c.bf16 %v306_v7, %v304_v6  ;;  %v357_v11 = vpack.c.bf16 %v311_v9, %v309_v8  ;;  %v308_v12 = vld [vmem:[%s2119_s6 + $0x100] sm:$0xff]  ;;  %v310_v13 = vld [vmem:[%s2119_s6 + $0x110] sm:$0xff]  ;;  %v317_v22 = vld [vmem:[%s2119_s6 + $0x148] sm:$0xff] }
  0x6c   : > { %v312_v19 = vld [vmem:[%s2119_s6 + $0x120] sm:$0xff]  ;;  %v314_v20 = vld [vmem:[%s2119_s6 + $0x130] sm:$0xff]  ;;  %v323_v33 = vld [vmem:[%s2119_s6 + $0x178] sm:$0xff] }
  0x6d   : > { %1448 = vmatpush3.bf16.msra.mxu0 %v1636_v14  ;;  %v313_v14 = vld [vmem:[%s2119_s6 + $0x128] sm:$0xff]  ;;  %v358_v25 = vpack.c.bf16 %v314_v20, %v312_v19  ;;  %v1659_v27 = vld [vmem:[#allocation7 + $0x14] ss:$8 sps:$4 sm:$0xff]   ;;  %v1661_v28 = vld [vmem:[#allocation7 + $0x10] ss:$8 sps:$4 sm:$0xff]  }
  0x6e   : > { %1449 = vmatprep.subr.bf16.mxu0 %v1637_v15  ;;  %831 = vmatpush1.bf16.msra.mxu1 %v1652_v44  ;;  %v315_v15 = vld [vmem:[%s2119_s6 + $0x138] sm:$0xff]  ;;  %v1656_v21 = vld [vmem:[#allocation7 + $0x24] ss:$8 sps:$4 sm:$0xff]   ;;  %v318_v30 = vld [vmem:[%s2119_s6 + $0x150] sm:$0xff] }
  0x6f   : > { %832 = vmatprep.subr.bf16.mxu1 %v1653_v45  ;;  %v1662_v31 = vld [vmem:[#allocation7 + $0x4] ss:$8 sps:$4 sm:$0xff]   ;;  %v1664_v34 = vld [vmem:[#allocation7] ss:$8 sps:$4 sm:$0xff]   ;;  %v322_v39 = vld [vmem:[%s2119_s6 + $0x170] sm:$0xff] }
  0x70   : > { %v320_v38 = vld [vmem:[%s2119_s6 + $0x160] sm:$0xff]  ;;  %v325_v40 = vld [vmem:[%s2119_s6 + $0x188] sm:$0xff]  ;;  %v326_v45 = vld [vmem:[%s2119_s6 + $0x190] sm:$0xff] }
  0x71   : > { %1450 = vmatpush3.bf16.msra.mxu0 %v1638_v16  ;;  %v356_v16 = vpack.c.bf16 %v310_v13, %v308_v12  ;;  %v362_v42 = vpack.c.bf16 %v322_v39, %v320_v38  ;;  %v324_v44 = vld [vmem:[%s2119_s6 + $0x180] sm:$0xff]  ;;  %v329_v46 = vld [vmem:[%s2119_s6 + $0x1a8] sm:$0xff]  ;;  %v331_v47 = vld [vmem:[%s2119_s6 + $0x1b8] sm:$0xff] }
  0x72   : > { %1451 = vmatprep.subr.bf16.mxu0 %v1639_v17  ;;  %v359_v17 = vpack.c.bf16 %v315_v15, %v313_v14  ;;  %v364_v48 = vpack.c.bf16 %v326_v45, %v324_v44  ;;  %v367_v49 = vpack.c.bf16 %v331_v47, %v329_v46  ;;  %v333_v52 = vld [vmem:[%s2119_s6 + $0x1c8] sm:$0xff]  ;;  %v335_v53 = vld [vmem:[%s2119_s6 + $0x1d8] sm:$0xff] }
  0x73   : > { %v369_v55 = vpack.c.bf16 %v335_v53, %v333_v52  ;;  %v337_v58 = vld [vmem:[%s2119_s6 + $0x1e8] sm:$0xff]  ;;  %v339_v59 = vld [vmem:[%s2119_s6 + $0x1f8] sm:$0xff] }
  0x74   : > { %v371_v61 = vpack.c.bf16 %v339_v59, %v337_v58 }
  0x75   : > { %1452 = vmatpush3.bf16.msra.mxu0 %v1640_v18  ;;  %v1655_v18 = vld [vmem:[#allocation7 + $0x30] ss:$8 sps:$4 sm:$0xff]  }
  0x76   : > { %833 = vmatpush1.bf16.msra.mxu1 %v1655_v18 }
  0x77   : > { %834 = vmatprep.subr.bf16.mxu1 %v1656_v21 }
  0x78   : > { %540 = vmatmul.mubr.bf16.vlgmr.msra.gmra.mxu0 %v340_v23  ;;  %v319_v23 = vld [vmem:[%s2119_s6 + $0x158] sm:$0xff] }
  0x79   : > { %547 = vmatprep.mubr.bf16.mxu0 %v343_v24  ;;  %v1658_v24 = vld [vmem:[#allocation7 + $0x20] ss:$8 sps:$4 sm:$0xff]   ;;  %v361_v26 = vpack.c.bf16 %v319_v23, %v317_v22 }
  0x7a   : > { %835 = vmatpush1.bf16.msra.mxu1 %v1658_v24 }
  0x7b   : > { %836 = vmatprep.subr.bf16.mxu1 %v1659_v27 }
  0x7e   : > { %837 = vmatpush1.bf16.msra.mxu1 %v1661_v28 }
  0x7f   : > { %838 = vmatprep.subr.bf16.mxu1 %v1662_v31 }
  0x80   : > { %548 = vmatmul.mubr.bf16.gmra.mxu0 %v342_v29  ;;  %v316_v29 = vld [vmem:[%s2119_s6 + $0x140] sm:$0xff] }
  0x81   : > { %555 = vmatprep.mubr.bf16.mxu0 %v345_v32  ;;  %v321_v32 = vld [vmem:[%s2119_s6 + $0x168] sm:$0xff]  ;;  %v360_v35 = vpack.c.bf16 %v318_v30, %v316_v29 }
  0x82   : > { %839 = vmatpush1.bf16.msra.mxu1 %v1664_v34  ;;  %v363_v36 = vpack.c.bf16 %v323_v33, %v321_v32 }
  0x88   : > { %556 = vmatmul.mubr.bf16.gmra.mxu0 %v344_v41  ;;  %v327_v41 = vld [vmem:[%s2119_s6 + $0x198] sm:$0xff] }
  0x89   : > { %563 = vmatprep.mubr.bf16.mxu0 %v347_v43  ;;  %v365_v43 = vpack.c.bf16 %v327_v41, %v325_v40 }
  0x90   : > { %564 = vmatmul.mubr.bf16.gmra.mxu0 %v346_v50  ;;  %v328_v50 = vld [vmem:[%s2119_s6 + $0x1a0] sm:$0xff] }
  0x91   : > { %571 = vmatprep.mubr.bf16.mxu0 %v349_v51  ;;  %v330_v51 = vld [vmem:[%s2119_s6 + $0x1b0] sm:$0xff] }
  0x92   : > { %v366_v54 = vpack.c.bf16 %v330_v51, %v328_v50 }
  0x98   : > { %572 = vmatmul.mubr.bf16.gmra.mxu0 %v348_v56  ;;  %v332_v56 = vld [vmem:[%s2119_s6 + $0x1c0] sm:$0xff] }
  0x99   : > { %579 = vmatprep.mubr.bf16.mxu0 %v351_v57  ;;  %v334_v57 = vld [vmem:[%s2119_s6 + $0x1d0] sm:$0xff] }
  0x9a   : > { %v368_v60 = vpack.c.bf16 %v334_v57, %v332_v56 }
  0xa0   : > { %580 = vmatmul.mubr.bf16.gmra.mxu0 %v350_v62  ;;  %v336_v62 = vld [vmem:[%s2119_s6 + $0x1e0] sm:$0xff] }
  0xa1   : > { %587 = vmatprep.mubr.bf16.mxu0 %v353_v63  ;;  %v338_v63 = vld [vmem:[%s2119_s6 + $0x1f0] sm:$0xff] }
  0xa2   : > { %v370_v0 = vpack.c.bf16 %v338_v63, %v336_v62 }
  0xa8   : > { %588 = vmatmul.mubr.bf16.gmra.mxu0 %v352_v4  ;;  %v2197_v4 = vld [vmem:[%s2437_s2] ss:$0 sm:$0xff] }
  0xa9   : > { %595 = vmatprep.mubr.bf16.mxu0 %v355_v5 }
  0xb0   : > { %596 = vmatmul.mubr.bf16.gmra.mxu0 %v354_v10 }
  0xb1   : > { %603 = vmatprep.mubr.bf16.mxu0 %v357_v11 }
  0xb8   : > { %604 = vmatmul.mubr.bf16.gmra.mxu0 %v356_v16 }
  0xb9   : > { %611 = vmatprep.mubr.bf16.mxu0 %v359_v17 }
  0xc0   : > { %612 = vmatmul.mubr.bf16.gmra.mxu0 %v358_v25 }
  0xc1   : > { %619 = vmatprep.mubr.bf16.mxu0 %v361_v26 }
  0xc8   : > { %620 = vmatmul.mubr.bf16.gmra.mxu0 %v360_v35 }
  0xc9   : > { %627 = vmatprep.mubr.bf16.mxu0 %v363_v36 }
  0xd0   : > { %628 = vmatmul.mubr.bf16.gmra.mxu0 %v362_v42 }
  0xd1   : > { %635 = vmatprep.mubr.bf16.mxu0 %v365_v43 }
  0xd8   : > { %636 = vmatmul.mubr.bf16.gmra.mxu0 %v364_v48 }
  0xd9   : > { %643 = vmatprep.mubr.bf16.mxu0 %v367_v49 }
  0xe0   : > { %644 = vmatmul.mubr.bf16.gmra.mxu0 %v366_v54 }
  0xe1   : > { %651 = vmatprep.mubr.bf16.mxu0 %v369_v55 }
  0xe8   : > { %652 = vmatmul.mubr.bf16.gmra.mxu0 %v368_v60 }
  0xe9   : > { %659 = vmatprep.mubr.bf16.mxu0 %v371_v61 }
  0xf0   : > { %660 = vmatmul.mubr.bf16.gmra.mxu0 %v370_v0 }
 0x138   : > { %v1453_v1 = vpop.f32.mrf.mxu0 }
 0x13a   : > { %v1454_v2 = vpop.f32.mrf.mxu0 }
 0x13b   : > { %v1455_v3 = vadd.f32 %v1454_v2, %v1453_v1 }
 0x13c   : > { %v1456_v5 = vpop.f32.mrf.mxu0 }
 0x13d   : > { %v542_v7 = vadd.f32 %v1455_v3, %v2197_v4 }
 0x13e   : > { %v1457_v6 = vpop.f32.mrf.mxu0 }
 0x13f   : > { %v1458_v8 = vadd.f32 %v1457_v6, %v1456_v5  ;;  %v668_v12 = vmax.f32 %v542_v7, 0.0 }
 0x140   : > { %v1459_v9 = vpop.f32.mrf.mxu0 }
 0x141   : > { %v545_v10 = vadd.f32 %v1458_v8, %v2197_v4 }
 0x142   : > { %v1460_v11 = vpop.f32.mrf.mxu0 }
 0x143   : > { %v669_v13 = vmax.f32 %v545_v10, 0.0  ;;  %v1461_v14 = vadd.f32 %v1460_v11, %v1459_v9 }
 0x144   : > { %v1462_v15 = vpop.f32.mrf.mxu0 }
 0x145   : > { %v700_v16 = vpack.c.bf16 %v669_v13, %v668_v12  ;;  %v550_v18 = vadd.f32 %v1461_v14, %v2197_v4 }
 0x146   : > { %v1463_v17 = vpop.f32.mrf.mxu0 }
 0x147   : > { %v1464_v19 = vadd.f32 %v1463_v17, %v1462_v15  ;;  %857 = vmatmul.mubr.bf16.vlgmr.msra.gmra.mxu1 %v700_v16  ;;  %v670_v23 = vmax.f32 %v550_v18, 0.0 }
 0x148   : > { %v1465_v20 = vpop.f32.mrf.mxu0  ;;  %866 = vmatprep.mubr.bf16.mxu1 %v1952_v37 }
 0x149   : > { %v553_v21 = vadd.f32 %v1464_v19, %v2197_v4 }
 0x14a   : > { %v1466_v22 = vpop.f32.mrf.mxu0 }
 0x14b   : > { %v671_v24 = vmax.f32 %v553_v21, 0.0  ;;  %v1467_v25 = vadd.f32 %v1466_v22, %v1465_v20 }
 0x14c   : > { %v1468_v26 = vpop.f32.mrf.mxu0 }
 0x14d   : > { %v701_v27 = vpack.c.bf16 %v671_v24, %v670_v23  ;;  %v558_v29 = vadd.f32 %v1467_v25, %v2197_v4 }
 0x14e   : > { %v1469_v28 = vpop.f32.mrf.mxu0 }
 0x14f   : > { %v1470_v30 = vadd.f32 %v1469_v28, %v1468_v26  ;;  %867 = vmatmul.mubr.bf16.gmra.mxu1 %v701_v27  ;;  %v672_v34 = vmax.f32 %v558_v29, 0.0 }
 0x150   : > { %v1471_v31 = vpop.f32.mrf.mxu0  ;;  %876 = vmatprep.mubr.bf16.mxu1 %v1952_v37 }
 0x151   : > { %v561_v32 = vadd.f32 %v1470_v30, %v2197_v4 }
 0x152   : > { %v1472_v33 = vpop.f32.mrf.mxu0 }
 0x153   : > { %v673_v35 = vmax.f32 %v561_v32, 0.0  ;;  %v1473_v36 = vadd.f32 %v1472_v33, %v1471_v31 }
 0x154   : > { %v1474_v38 = vpop.f32.mrf.mxu0 }
 0x155   : > { %v702_v39 = vpack.c.bf16 %v673_v35, %v672_v34  ;;  %v566_v41 = vadd.f32 %v1473_v36, %v2197_v4 }
 0x156   : > { %v1475_v40 = vpop.f32.mrf.mxu0 }
 0x157   : > { %v1476_v42 = vadd.f32 %v1475_v40, %v1474_v38  ;;  %877 = vmatmul.mubr.bf16.gmra.mxu1 %v702_v39  ;;  %v674_v46 = vmax.f32 %v566_v41, 0.0 }
 0x158   : > { %v1477_v43 = vpop.f32.mrf.mxu0  ;;  %886 = vmatprep.mubr.bf16.mxu1 %v1952_v37 }
 0x159   : > { %v569_v44 = vadd.f32 %v1476_v42, %v2197_v4 }
 0x15a   : > { %v1478_v45 = vpop.f32.mrf.mxu0 }
 0x15b   : > { %v675_v47 = vmax.f32 %v569_v44, 0.0  ;;  %v1479_v48 = vadd.f32 %v1478_v45, %v1477_v43 }
 0x15c   : > { %v1480_v49 = vpop.f32.mrf.mxu0 }
 0x15d   : > { %v703_v50 = vpack.c.bf16 %v675_v47, %v674_v46  ;;  %v574_v52 = vadd.f32 %v1479_v48, %v2197_v4 }
 0x15e   : > { %v1481_v51 = vpop.f32.mrf.mxu0 }
 0x15f   : > { %v1482_v53 = vadd.f32 %v1481_v51, %v1480_v49  ;;  %887 = vmatmul.mubr.bf16.gmra.mxu1 %v703_v50  ;;  %v676_v57 = vmax.f32 %v574_v52, 0.0 }
 0x160   : > { %v1483_v54 = vpop.f32.mrf.mxu0  ;;  %896 = vmatprep.mubr.bf16.mxu1 %v1952_v37 }
 0x161   : > { %v577_v55 = vadd.f32 %v1482_v53, %v2197_v4 }
 0x162   : > { %v1484_v56 = vpop.f32.mrf.mxu0 }
 0x163   : > { %v677_v58 = vmax.f32 %v577_v55, 0.0  ;;  %v1485_v59 = vadd.f32 %v1484_v56, %v1483_v54 }
 0x164   : > { %v1486_v60 = vpop.f32.mrf.mxu0 }
 0x165   : > { %v704_v61 = vpack.c.bf16 %v677_v58, %v676_v57  ;;  %v582_v63 = vadd.f32 %v1485_v59, %v2197_v4 }
 0x166   : > { %v1487_v62 = vpop.f32.mrf.mxu0 }
 0x167   : > { %v1488_v0 = vadd.f32 %v1487_v62, %v1486_v60  ;;  %897 = vmatmul.mubr.bf16.gmra.mxu1 %v704_v61  ;;  %v678_v5 = vmax.f32 %v582_v63, 0.0 }
 0x168   : > { %v1489_v1 = vpop.f32.mrf.mxu0  ;;  %906 = vmatprep.mubr.bf16.mxu1 %v1952_v37 }
 0x169   : > { %v585_v2 = vadd.f32 %v1488_v0, %v2197_v4 }
 0x16a   : > { %v1490_v3 = vpop.f32.mrf.mxu0 }
 0x16b   : > { %v679_v6 = vmax.f32 %v585_v2, 0.0  ;;  %v1491_v7 = vadd.f32 %v1490_v3, %v1489_v1 }
 0x16c   : > { %v1492_v8 = vpop.f32.mrf.mxu0 }
 0x16d   : > { %v705_v9 = vpack.c.bf16 %v679_v6, %v678_v5  ;;  %v590_v11 = vadd.f32 %v1491_v7, %v2197_v4 }
 0x16e   : > { %v1493_v10 = vpop.f32.mrf.mxu0 }
 0x16f   : > { %v1494_v12 = vadd.f32 %v1493_v10, %v1492_v8  ;;  %907 = vmatmul.mubr.bf16.gmra.mxu1 %v705_v9  ;;  %v680_v16 = vmax.f32 %v590_v11, 0.0 }
 0x170   : > { %v1495_v13 = vpop.f32.mrf.mxu0  ;;  %916 = vmatprep.mubr.bf16.mxu1 %v1952_v37 }
 0x171   : > { %v593_v14 = vadd.f32 %v1494_v12, %v2197_v4 }
 0x172   : > { %v1496_v15 = vpop.f32.mrf.mxu0 }
 0x173   : > { %v681_v17 = vmax.f32 %v593_v14, 0.0  ;;  %v1497_v18 = vadd.f32 %v1496_v15, %v1495_v13 }
 0x174   : > { %v1498_v19 = vpop.f32.mrf.mxu0 }
 0x175   : > { %v706_v20 = vpack.c.bf16 %v681_v17, %v680_v16  ;;  %v598_v22 = vadd.f32 %v1497_v18, %v2197_v4 }
 0x176   : > { %v1499_v21 = vpop.f32.mrf.mxu0 }
 0x177   : > { %v1500_v23 = vadd.f32 %v1499_v21, %v1498_v19  ;;  %917 = vmatmul.mubr.bf16.gmra.mxu1 %v706_v20  ;;  %v682_v27 = vmax.f32 %v598_v22, 0.0 }
 0x178   : > { %v1501_v24 = vpop.f32.mrf.mxu0  ;;  %926 = vmatprep.mubr.bf16.mxu1 %v1952_v37 }
 0x179   : > { %v601_v25 = vadd.f32 %v1500_v23, %v2197_v4 }
 0x17a   : > { %v1502_v26 = vpop.f32.mrf.mxu0 }
 0x17b   : > { %v683_v28 = vmax.f32 %v601_v25, 0.0  ;;  %v1503_v29 = vadd.f32 %v1502_v26, %v1501_v24 }
 0x17c   : > { %v1504_v30 = vpop.f32.mrf.mxu0 }
 0x17d   : > { %v707_v31 = vpack.c.bf16 %v683_v28, %v682_v27  ;;  %v606_v33 = vadd.f32 %v1503_v29, %v2197_v4 }
 0x17e   : > { %v1505_v32 = vpop.f32.mrf.mxu0 }
 0x17f   : > { %v1506_v34 = vadd.f32 %v1505_v32, %v1504_v30  ;;  %927 = vmatmul.mubr.bf16.gmra.mxu1 %v707_v31  ;;  %v684_v39 = vmax.f32 %v606_v33, 0.0 }
 0x180   : > { %v1507_v35 = vpop.f32.mrf.mxu0  ;;  %936 = vmatprep.mubr.bf16.mxu1 %v1952_v37 }
 0x181   : > { %v609_v36 = vadd.f32 %v1506_v34, %v2197_v4 }
 0x182   : > { %v1508_v38 = vpop.f32.mrf.mxu0 }
 0x183   : > { %v685_v40 = vmax.f32 %v609_v36, 0.0  ;;  %v1509_v41 = vadd.f32 %v1508_v38, %v1507_v35 }
 0x184   : > { %v1510_v42 = vpop.f32.mrf.mxu0 }
 0x185   : > { %v708_v43 = vpack.c.bf16 %v685_v40, %v684_v39  ;;  %v614_v45 = vadd.f32 %v1509_v41, %v2197_v4 }
 0x186   : > { %v1511_v44 = vpop.f32.mrf.mxu0 }
 0x187   : > { %v1512_v46 = vadd.f32 %v1511_v44, %v1510_v42  ;;  %937 = vmatmul.mubr.bf16.gmra.mxu1 %v708_v43  ;;  %v686_v50 = vmax.f32 %v614_v45, 0.0 }
 0x188   : > { %v1513_v47 = vpop.f32.mrf.mxu0  ;;  %946 = vmatprep.mubr.bf16.mxu1 %v1952_v37 }
 0x189   : > { %v617_v48 = vadd.f32 %v1512_v46, %v2197_v4 }
 0x18a   : > { %v1514_v49 = vpop.f32.mrf.mxu0 }
 0x18b   : > { %v687_v51 = vmax.f32 %v617_v48, 0.0  ;;  %v1515_v52 = vadd.f32 %v1514_v49, %v1513_v47 }
 0x18c   : > { %v1516_v53 = vpop.f32.mrf.mxu0 }
 0x18d   : > { %v709_v54 = vpack.c.bf16 %v687_v51, %v686_v50  ;;  %v622_v56 = vadd.f32 %v1515_v52, %v2197_v4 }
 0x18e   : > { %v1517_v55 = vpop.f32.mrf.mxu0 }
 0x18f   : > { %v1518_v57 = vadd.f32 %v1517_v55, %v1516_v53  ;;  %947 = vmatmul.mubr.bf16.gmra.mxu1 %v709_v54  ;;  %v688_v61 = vmax.f32 %v622_v56, 0.0  ;;  %v734_v55 = vlaneseq }
 0x190   : > { %v1519_v58 = vpop.f32.mrf.mxu0  ;;  %956 = vmatprep.mubr.bf16.mxu1 %v1952_v37 }
 0x191   : > { %v625_v59 = vadd.f32 %v1518_v57, %v2197_v4  ;;  %v735_v56 = vshrl.u32 %v734_v55, 7 }
 0x192   : > { %v1520_v60 = vpop.f32.mrf.mxu0 }
 0x193   : > { %v689_v62 = vmax.f32 %v625_v59, 0.0  ;;  %v1521_v63 = vadd.f32 %v1520_v60, %v1519_v58  ;;  %v736_v57 = vsub.s32 0, %v735_v56  ;;  %v732_v58 = vld [vmem:[%s2439_s4] sm:$0x3]  ;;  %v740_v59 = vsub.s32 1, %v735_v56 }
 0x194   : > { %v1522_v0 = vpop.f32.mrf.mxu0 }
 0x195   : > { %v710_v1 = vpack.c.bf16 %v689_v62, %v688_v61  ;;  %v630_v3 = vadd.f32 %v1521_v63, %v2197_v4  ;;  %v2249_v60 = vrot.slane %v732_v58, %v736_v57  ;;  %v2251_v61 = vrot.slane %v732_v58, %v740_v59 }
 0x196   : > { %v1523_v2 = vpop.f32.mrf.mxu0 }
 0x197   : > { %v1524_v5 = vadd.f32 %v1523_v2, %v1522_v0  ;;  %957 = vmatmul.mubr.bf16.gmra.mxu1 %v710_v1  ;;  %v690_v9 = vmax.f32 %v630_v3, 0.0 }
 0x198   : > { %v1525_v6 = vpop.f32.mrf.mxu0  ;;  %966 = vmatprep.mubr.bf16.mxu1 %v1952_v37 }
 0x199   : > { %v633_v7 = vadd.f32 %v1524_v5, %v2197_v4 }
 0x19a   : > { %v1526_v8 = vpop.f32.mrf.mxu0 }
 0x19b   : > { %v691_v10 = vmax.f32 %v633_v7, 0.0  ;;  %v1527_v11 = vadd.f32 %v1526_v8, %v1525_v6 }
 0x19c   : > { %v1528_v12 = vpop.f32.mrf.mxu0 }
 0x19d   : > { %v711_v13 = vpack.c.bf16 %v691_v10, %v690_v9  ;;  %v638_v15 = vadd.f32 %v1527_v11, %v2197_v4 }
 0x19e   : > { %v1529_v14 = vpop.f32.mrf.mxu0 }
 0x19f   : > { %v1530_v16 = vadd.f32 %v1529_v14, %v1528_v12  ;;  %967 = vmatmul.mubr.bf16.gmra.mxu1 %v711_v13  ;;  %v692_v20 = vmax.f32 %v638_v15, 0.0 }
 0x1a0   : > { %v1531_v17 = vpop.f32.mrf.mxu0  ;;  %976 = vmatprep.mubr.bf16.mxu1 %v1952_v37 }
 0x1a1   : > { %v641_v18 = vadd.f32 %v1530_v16, %v2197_v4 }
 0x1a2   : > { %v1532_v19 = vpop.f32.mrf.mxu0 }
 0x1a3   : > { %v693_v21 = vmax.f32 %v641_v18, 0.0  ;;  %v1533_v22 = vadd.f32 %v1532_v19, %v1531_v17 }
 0x1a4   : > { %v1534_v23 = vpop.f32.mrf.mxu0 }
 0x1a5   : > { %v712_v24 = vpack.c.bf16 %v693_v21, %v692_v20  ;;  %v646_v26 = vadd.f32 %v1533_v22, %v2197_v4 }
 0x1a6   : > { %v1535_v25 = vpop.f32.mrf.mxu0 }
 0x1a7   : > { %v1536_v27 = vadd.f32 %v1535_v25, %v1534_v23  ;;  %977 = vmatmul.mubr.bf16.gmra.mxu1 %v712_v24  ;;  %v694_v31 = vmax.f32 %v646_v26, 0.0 }
 0x1a8   : > { %v1537_v28 = vpop.f32.mrf.mxu0  ;;  %986 = vmatprep.mubr.bf16.mxu1 %v1952_v37 }
 0x1a9   : > { %v649_v29 = vadd.f32 %v1536_v27, %v2197_v4 }
 0x1aa   : > { %v1538_v30 = vpop.f32.mrf.mxu0 }
 0x1ab   : > { %v695_v32 = vmax.f32 %v649_v29, 0.0  ;;  %v1539_v33 = vadd.f32 %v1538_v30, %v1537_v28 }
 0x1ac   : > { %v1540_v34 = vpop.f32.mrf.mxu0 }
 0x1ad   : > { %v713_v35 = vpack.c.bf16 %v695_v32, %v694_v31  ;;  %v654_v38 = vadd.f32 %v1539_v33, %v2197_v4 }
 0x1ae   : > { %v1541_v36 = vpop.f32.mrf.mxu0 }
 0x1af   : > { %v1542_v39 = vadd.f32 %v1541_v36, %v1540_v34  ;;  %987 = vmatmul.mubr.bf16.gmra.mxu1 %v713_v35  ;;  %v696_v43 = vmax.f32 %v654_v38, 0.0 }
 0x1b0   : > { %v1543_v40 = vpop.f32.mrf.mxu0  ;;  %996 = vmatprep.mubr.bf16.mxu1 %v1952_v37 }
 0x1b1   : > { %v657_v41 = vadd.f32 %v1542_v39, %v2197_v4 }
 0x1b2   : > { %v1544_v42 = vpop.f32.mrf.mxu0 }
 0x1b3   : > { %v697_v44 = vmax.f32 %v657_v41, 0.0  ;;  %v1545_v45 = vadd.f32 %v1544_v42, %v1543_v40 }
 0x1b4   : > { %v1546_v46 = vpop.f32.mrf.mxu0 }
 0x1b5   : > { %v714_v47 = vpack.c.bf16 %v697_v44, %v696_v43  ;;  %v662_v49 = vadd.f32 %v1545_v45, %v2197_v4 }
 0x1b6   : > { %v1547_v48 = vpop.f32.mrf.mxu0 }
 0x1b7   : > { %v1548_v50 = vadd.f32 %v1547_v48, %v1546_v46  ;;  %997 = vmatmul.mubr.bf16.gmra.mxu1 %v714_v47  ;;  %v698_v52 = vmax.f32 %v662_v49, 0.0 }
 0x1b8   : > { %1006 = vmatprep.mubr.bf16.mxu1 %v1952_v37 }
 0x1b9   : > { %v665_v51 = vadd.f32 %v1548_v50, %v2197_v4 }
 0x1bb   : > { %v699_v53 = vmax.f32 %v665_v51, 0.0 }
 0x1bd   : > { %v715_v54 = vpack.c.bf16 %v699_v53, %v698_v52 }
 0x1bf   : > { %1007 = vmatmul.mubr.bf16.gmra.mxu1 %v715_v54 }
 0x207   : > { %v858_v62 = vpop.f32.mrf.mxu1 }
 0x208   : > { %v859_v37 = vadd.f32 %v858_v62, %v2249_v60 }
 0x209   : > { %v860_v4 = vpop.f32.mrf.mxu1 }
 0x20a   : > { %1665 = vtanh.f32 %v859_v37  ;;  %v861_v63 = vadd.f32 %v860_v4, %v2251_v61 }
 0x20b   : > { %v862_v0 = vpop.f32.mrf.mxu1 }
 0x20c   : > { %1667 = vtanh.f32 %v861_v63  ;;  %v863_v1 = vadd.f32 %v862_v0, %v2249_v60 }
 0x20d   : > { %v864_v2 = vpop.f32.mrf.mxu1 }
 0x20e   : > { %1669 = vtanh.f32 %v863_v1  ;;  %v865_v3 = vadd.f32 %v864_v2, %v2251_v61 }
 0x20f   : > { %v868_v5 = vpop.f32.mrf.mxu1 }
 0x210   : > { %1671 = vtanh.f32 %v865_v3  ;;  %v869_v6 = vadd.f32 %v868_v5, %v2249_v60 }
 0x211   : > { %v870_v7 = vpop.f32.mrf.mxu1 }
 0x212   : > { %1673 = vtanh.f32 %v869_v6  ;;  %v871_v8 = vadd.f32 %v870_v7, %v2251_v61 }
 0x213   : > { %v872_v9 = vpop.f32.mrf.mxu1 }
 0x214   : > { %1675 = vtanh.f32 %v871_v8  ;;  %v873_v10 = vadd.f32 %v872_v9, %v2249_v60 }
 0x215   : > { %v874_v11 = vpop.f32.mrf.mxu1 }
 0x216   : > { %1677 = vtanh.f32 %v873_v10  ;;  %v875_v12 = vadd.f32 %v874_v11, %v2251_v61 }
 0x217   : > { %v1666_v13 = vpop.eup %1665  ;;  %v878_v14 = vpop.f32.mrf.mxu1 }
 0x218   : > { %v1081_v15 = vmul.f32 0.5, %v1666_v13  ;;  %1679 = vtanh.f32 %v875_v12  ;;  %v879_v16 = vadd.f32 %v878_v14, %v2249_v60 }
 0x219   : > { %v1668_v17 = vpop.eup %1667  ;;  %v880_v18 = vpop.f32.mrf.mxu1 }
 0x21a   : > { %v1145_v19 = vadd.f32 0.5, %v1081_v15  ;;  %v1082_v20 = vmul.f32 0.5, %v1668_v17  ;;  %1681 = vtanh.f32 %v879_v16  ;;  %v881_v21 = vadd.f32 %v880_v18, %v2251_v61 }
 0x21b   : > { %v1670_v22 = vpop.eup %1669  ;;  %v882_v23 = vpop.f32.mrf.mxu1 }
 0x21c   : > { %1209 = vst [vmem:[%s2265_s13] sm:$0xff] %v1145_v19  ;;  %v1146_v24 = vadd.f32 0.5, %v1082_v20  ;;  %v1083_v25 = vmul.f32 0.5, %v1670_v22  ;;  %1683 = vtanh.f32 %v881_v21  ;;  %v883_v26 = vadd.f32 %v882_v23, %v2249_v60 }
 0x21d   : > { %v1672_v27 = vpop.eup %1671  ;;  %v884_v28 = vpop.f32.mrf.mxu1 }
 0x21e   : > { %1210 = vst [vmem:[%s2265_s13 + $0x8] sm:$0xff] %v1146_v24  ;;  %v1147_v29 = vadd.f32 0.5, %v1083_v25  ;;  %v1084_v30 = vmul.f32 0.5, %v1672_v27  ;;  %1685 = vtanh.f32 %v883_v26  ;;  %v885_v31 = vadd.f32 %v884_v28, %v2251_v61 }
 0x21f   : > { %v1674_v32 = vpop.eup %1673  ;;  %v888_v33 = vpop.f32.mrf.mxu1 }
 0x220   : > { %1211 = vst [vmem:[%s2265_s13 + $0x10] sm:$0xff] %v1147_v29  ;;  %v1148_v34 = vadd.f32 0.5, %v1084_v30  ;;  %v1085_v35 = vmul.f32 0.5, %v1674_v32  ;;  %1687 = vtanh.f32 %v885_v31  ;;  %v889_v36 = vadd.f32 %v888_v33, %v2249_v60 }
 0x221   : > { %v1676_v38 = vpop.eup %1675  ;;  %v890_v39 = vpop.f32.mrf.mxu1 }
 0x222   : > { %1212 = vst [vmem:[%s2265_s13 + $0x18] sm:$0xff] %v1148_v34  ;;  %v1149_v40 = vadd.f32 0.5, %v1085_v35  ;;  %v1086_v41 = vmul.f32 0.5, %v1676_v38  ;;  %1689 = vtanh.f32 %v889_v36  ;;  %v891_v42 = vadd.f32 %v890_v39, %v2251_v61 }
 0x223   : > { %v1678_v43 = vpop.eup %1677  ;;  %v892_v44 = vpop.f32.mrf.mxu1 }
 0x224   : > { %1213 = vst [vmem:[%s2265_s13 + $0x20] sm:$0xff] %v1149_v40  ;;  %v1150_v45 = vadd.f32 0.5, %v1086_v41  ;;  %v1087_v46 = vmul.f32 0.5, %v1678_v43  ;;  %1691 = vtanh.f32 %v891_v42  ;;  %v893_v47 = vadd.f32 %v892_v44, %v2249_v60 }
 0x225   : > { %v1680_v48 = vpop.eup %1679  ;;  %v894_v49 = vpop.f32.mrf.mxu1 }
 0x226   : > { %1214 = vst [vmem:[%s2265_s13 + $0x28] sm:$0xff] %v1150_v45  ;;  %v1151_v50 = vadd.f32 0.5, %v1087_v46  ;;  %v1088_v51 = vmul.f32 0.5, %v1680_v48  ;;  %1693 = vtanh.f32 %v893_v47  ;;  %v895_v52 = vadd.f32 %v894_v49, %v2251_v61 }
 0x227   : > { %v1682_v53 = vpop.eup %1681  ;;  %v898_v54 = vpop.f32.mrf.mxu1 }
 0x228   : > { %1215 = vst [vmem:[%s2265_s13 + $0x30] sm:$0xff] %v1151_v50  ;;  %v1152_v55 = vadd.f32 0.5, %v1088_v51  ;;  %v1089_v56 = vmul.f32 0.5, %v1682_v53  ;;  %1695 = vtanh.f32 %v895_v52  ;;  %v899_v57 = vadd.f32 %v898_v54, %v2249_v60 }
 0x229   : > { %v1684_v58 = vpop.eup %1683  ;;  %v900_v59 = vpop.f32.mrf.mxu1 }
 0x22a   : > { %1216 = vst [vmem:[%s2265_s13 + $0x38] sm:$0xff] %v1152_v55  ;;  %v1153_v62 = vadd.f32 0.5, %v1089_v56  ;;  %v1090_v37 = vmul.f32 0.5, %v1684_v58  ;;  %1697 = vtanh.f32 %v899_v57  ;;  %v901_v4 = vadd.f32 %v900_v59, %v2251_v61 }
 0x22b   : > { %v1686_v63 = vpop.eup %1685  ;;  %v902_v0 = vpop.f32.mrf.mxu1 }
 0x22c   : > { %1217 = vst [vmem:[%s2265_s13 + $0x40] sm:$0xff] %v1153_v62  ;;  %v1154_v1 = vadd.f32 0.5, %v1090_v37  ;;  %v1091_v2 = vmul.f32 0.5, %v1686_v63  ;;  %1699 = vtanh.f32 %v901_v4  ;;  %v903_v3 = vadd.f32 %v902_v0, %v2249_v60 }
 0x22d   : > { %v1688_v5 = vpop.eup %1687  ;;  %v904_v6 = vpop.f32.mrf.mxu1 }
 0x22e   : > { %1218 = vst [vmem:[%s2265_s13 + $0x48] sm:$0xff] %v1154_v1  ;;  %v1155_v7 = vadd.f32 0.5, %v1091_v2  ;;  %v1092_v8 = vmul.f32 0.5, %v1688_v5  ;;  %1701 = vtanh.f32 %v903_v3  ;;  %v905_v9 = vadd.f32 %v904_v6, %v2251_v61 }
 0x22f   : > { %v1690_v10 = vpop.eup %1689  ;;  %v908_v11 = vpop.f32.mrf.mxu1 }
 0x230   : > { %1219 = vst [vmem:[%s2265_s13 + $0x50] sm:$0xff] %v1155_v7  ;;  %v1156_v12 = vadd.f32 0.5, %v1092_v8  ;;  %v1093_v13 = vmul.f32 0.5, %v1690_v10  ;;  %1703 = vtanh.f32 %v905_v9  ;;  %v909_v14 = vadd.f32 %v908_v11, %v2249_v60 }
 0x231   : > { %v1692_v15 = vpop.eup %1691  ;;  %v910_v16 = vpop.f32.mrf.mxu1 }
 0x232   : > { %1220 = vst [vmem:[%s2265_s13 + $0x58] sm:$0xff] %v1156_v12  ;;  %v1157_v17 = vadd.f32 0.5, %v1093_v13  ;;  %v1094_v18 = vmul.f32 0.5, %v1692_v15  ;;  %1705 = vtanh.f32 %v909_v14  ;;  %v911_v19 = vadd.f32 %v910_v16, %v2251_v61 }
 0x233   : > { %v1694_v20 = vpop.eup %1693  ;;  %v912_v21 = vpop.f32.mrf.mxu1 }
 0x234   : > { %1221 = vst [vmem:[%s2265_s13 + $0x60] sm:$0xff] %v1157_v17  ;;  %v1158_v22 = vadd.f32 0.5, %v1094_v18  ;;  %v1095_v23 = vmul.f32 0.5, %v1694_v20  ;;  %1707 = vtanh.f32 %v911_v19  ;;  %v913_v24 = vadd.f32 %v912_v21, %v2249_v60 }
 0x235   : > { %v1696_v25 = vpop.eup %1695  ;;  %v914_v26 = vpop.f32.mrf.mxu1 }
 0x236   : > { %1222 = vst [vmem:[%s2265_s13 + $0x68] sm:$0xff] %v1158_v22  ;;  %v1159_v27 = vadd.f32 0.5, %v1095_v23  ;;  %v1096_v28 = vmul.f32 0.5, %v1696_v25  ;;  %1709 = vtanh.f32 %v913_v24  ;;  %v915_v29 = vadd.f32 %v914_v26, %v2251_v61 }
 0x237   : > { %v1698_v30 = vpop.eup %1697  ;;  %v918_v31 = vpop.f32.mrf.mxu1 }
 0x238   : > { %1223 = vst [vmem:[%s2265_s13 + $0x70] sm:$0xff] %v1159_v27  ;;  %v1160_v32 = vadd.f32 0.5, %v1096_v28  ;;  %v1097_v33 = vmul.f32 0.5, %v1698_v30  ;;  %1711 = vtanh.f32 %v915_v29  ;;  %v919_v34 = vadd.f32 %v918_v31, %v2249_v60 }
 0x239   : > { %v1700_v35 = vpop.eup %1699  ;;  %v920_v36 = vpop.f32.mrf.mxu1 }
 0x23a   : > { %1224 = vst [vmem:[%s2265_s13 + $0x78] sm:$0xff] %v1160_v32  ;;  %v1161_v38 = vadd.f32 0.5, %v1097_v33  ;;  %v1098_v39 = vmul.f32 0.5, %v1700_v35  ;;  %1713 = vtanh.f32 %v919_v34  ;;  %v921_v40 = vadd.f32 %v920_v36, %v2251_v61 }
 0x23b   : > { %v1702_v41 = vpop.eup %1701  ;;  %v922_v42 = vpop.f32.mrf.mxu1 }
 0x23c   : > { %1225 = vst [vmem:[%s2265_s13 + $0x80] sm:$0xff] %v1161_v38  ;;  %v1162_v43 = vadd.f32 0.5, %v1098_v39  ;;  %v1099_v44 = vmul.f32 0.5, %v1702_v41  ;;  %1715 = vtanh.f32 %v921_v40  ;;  %v923_v45 = vadd.f32 %v922_v42, %v2249_v60 }
 0x23d   : > { %v1704_v46 = vpop.eup %1703  ;;  %v924_v47 = vpop.f32.mrf.mxu1 }
 0x23e   : > { %1226 = vst [vmem:[%s2265_s13 + $0x88] sm:$0xff] %v1162_v43  ;;  %v1163_v48 = vadd.f32 0.5, %v1099_v44  ;;  %v1100_v49 = vmul.f32 0.5, %v1704_v46  ;;  %1717 = vtanh.f32 %v923_v45  ;;  %v925_v50 = vadd.f32 %v924_v47, %v2251_v61 }
 0x23f   : > { %v1706_v51 = vpop.eup %1705  ;;  %v928_v52 = vpop.f32.mrf.mxu1 }
 0x240   : > { %1227 = vst [vmem:[%s2265_s13 + $0x90] sm:$0xff] %v1163_v48  ;;  %v1164_v53 = vadd.f32 0.5, %v1100_v49  ;;  %v1101_v54 = vmul.f32 0.5, %v1706_v51  ;;  %1719 = vtanh.f32 %v925_v50  ;;  %v929_v55 = vadd.f32 %v928_v52, %v2249_v60 }
 0x241   : > { %v1708_v56 = vpop.eup %1707  ;;  %v930_v57 = vpop.f32.mrf.mxu1 }
 0x242   : > { %1228 = vst [vmem:[%s2265_s13 + $0x98] sm:$0xff] %v1164_v53  ;;  %v1165_v58 = vadd.f32 0.5, %v1101_v54  ;;  %v1102_v59 = vmul.f32 0.5, %v1708_v56  ;;  %1721 = vtanh.f32 %v929_v55  ;;  %v931_v62 = vadd.f32 %v930_v57, %v2251_v61 }
 0x243   : > { %v1710_v37 = vpop.eup %1709  ;;  %v932_v4 = vpop.f32.mrf.mxu1 }
 0x244   : > { %1229 = vst [vmem:[%s2265_s13 + $0xa0] sm:$0xff] %v1165_v58  ;;  %v1166_v63 = vadd.f32 0.5, %v1102_v59  ;;  %v1103_v0 = vmul.f32 0.5, %v1710_v37  ;;  %1723 = vtanh.f32 %v931_v62  ;;  %v933_v1 = vadd.f32 %v932_v4, %v2249_v60 }
 0x245   : > { %v1712_v2 = vpop.eup %1711  ;;  %v934_v3 = vpop.f32.mrf.mxu1 }
 0x246   : > { %1230 = vst [vmem:[%s2265_s13 + $0xa8] sm:$0xff] %v1166_v63  ;;  %v1167_v5 = vadd.f32 0.5, %v1103_v0  ;;  %v1104_v6 = vmul.f32 0.5, %v1712_v2  ;;  %1725 = vtanh.f32 %v933_v1  ;;  %v935_v7 = vadd.f32 %v934_v3, %v2251_v61 }
 0x247   : > { %v1714_v8 = vpop.eup %1713  ;;  %v938_v9 = vpop.f32.mrf.mxu1 }
 0x248   : > { %1231 = vst [vmem:[%s2265_s13 + $0xb0] sm:$0xff] %v1167_v5  ;;  %v1168_v10 = vadd.f32 0.5, %v1104_v6  ;;  %v1105_v11 = vmul.f32 0.5, %v1714_v8  ;;  %1727 = vtanh.f32 %v935_v7  ;;  %v939_v12 = vadd.f32 %v938_v9, %v2249_v60 }
 0x249   : > { %v1716_v13 = vpop.eup %1715  ;;  %v940_v14 = vpop.f32.mrf.mxu1 }
 0x24a   : > { %1232 = vst [vmem:[%s2265_s13 + $0xb8] sm:$0xff] %v1168_v10  ;;  %v1169_v15 = vadd.f32 0.5, %v1105_v11  ;;  %v1106_v16 = vmul.f32 0.5, %v1716_v13  ;;  %1729 = vtanh.f32 %v939_v12  ;;  %v941_v17 = vadd.f32 %v940_v14, %v2251_v61 }
 0x24b   : > { %v1718_v18 = vpop.eup %1717  ;;  %v942_v19 = vpop.f32.mrf.mxu1 }
 0x24c   : > { %1233 = vst [vmem:[%s2265_s13 + $0xc0] sm:$0xff] %v1169_v15  ;;  %v1170_v20 = vadd.f32 0.5, %v1106_v16  ;;  %v1107_v21 = vmul.f32 0.5, %v1718_v18  ;;  %1731 = vtanh.f32 %v941_v17  ;;  %v943_v22 = vadd.f32 %v942_v19, %v2249_v60 }
 0x24d   : > { %v1720_v23 = vpop.eup %1719  ;;  %v944_v24 = vpop.f32.mrf.mxu1 }
 0x24e   : > { %1234 = vst [vmem:[%s2265_s13 + $0xc8] sm:$0xff] %v1170_v20  ;;  %v1171_v25 = vadd.f32 0.5, %v1107_v21  ;;  %v1108_v26 = vmul.f32 0.5, %v1720_v23  ;;  %1733 = vtanh.f32 %v943_v22  ;;  %v945_v27 = vadd.f32 %v944_v24, %v2251_v61 }
 0x24f   : > { %v1722_v28 = vpop.eup %1721  ;;  %v948_v29 = vpop.f32.mrf.mxu1 }
 0x250   : > { %1235 = vst [vmem:[%s2265_s13 + $0xd0] sm:$0xff] %v1171_v25  ;;  %v1172_v30 = vadd.f32 0.5, %v1108_v26  ;;  %v1109_v31 = vmul.f32 0.5, %v1722_v28  ;;  %1735 = vtanh.f32 %v945_v27  ;;  %v949_v32 = vadd.f32 %v948_v29, %v2249_v60 }
 0x251   : > { %v1724_v33 = vpop.eup %1723  ;;  %v950_v34 = vpop.f32.mrf.mxu1 }
 0x252   : > { %1236 = vst [vmem:[%s2265_s13 + $0xd8] sm:$0xff] %v1172_v30  ;;  %v1173_v35 = vadd.f32 0.5, %v1109_v31  ;;  %v1110_v36 = vmul.f32 0.5, %v1724_v33  ;;  %1737 = vtanh.f32 %v949_v32  ;;  %v951_v38 = vadd.f32 %v950_v34, %v2251_v61 }
 0x253   : > { %v1726_v39 = vpop.eup %1725  ;;  %v952_v40 = vpop.f32.mrf.mxu1 }
 0x254   : > { %1237 = vst [vmem:[%s2265_s13 + $0xe0] sm:$0xff] %v1173_v35  ;;  %v1174_v41 = vadd.f32 0.5, %v1110_v36  ;;  %v1111_v42 = vmul.f32 0.5, %v1726_v39  ;;  %1739 = vtanh.f32 %v951_v38  ;;  %v953_v43 = vadd.f32 %v952_v40, %v2249_v60 }
 0x255   : > { %v1728_v44 = vpop.eup %1727  ;;  %v954_v45 = vpop.f32.mrf.mxu1 }
 0x256   : > { %1238 = vst [vmem:[%s2265_s13 + $0xe8] sm:$0xff] %v1174_v41  ;;  %v1175_v46 = vadd.f32 0.5, %v1111_v42  ;;  %v1112_v47 = vmul.f32 0.5, %v1728_v44  ;;  %1741 = vtanh.f32 %v953_v43  ;;  %v955_v48 = vadd.f32 %v954_v45, %v2251_v61 }
 0x257   : > { %v1730_v49 = vpop.eup %1729  ;;  %v958_v50 = vpop.f32.mrf.mxu1 }
 0x258   : > { %1239 = vst [vmem:[%s2265_s13 + $0xf0] sm:$0xff] %v1175_v46  ;;  %v1176_v51 = vadd.f32 0.5, %v1112_v47  ;;  %v1113_v52 = vmul.f32 0.5, %v1730_v49  ;;  %1743 = vtanh.f32 %v955_v48  ;;  %v959_v53 = vadd.f32 %v958_v50, %v2249_v60 }
 0x259   : > { %v1732_v54 = vpop.eup %1731  ;;  %v960_v55 = vpop.f32.mrf.mxu1 }
 0x25a   : > { %1240 = vst [vmem:[%s2265_s13 + $0xf8] sm:$0xff] %v1176_v51  ;;  %v1177_v56 = vadd.f32 0.5, %v1113_v52  ;;  %v1114_v57 = vmul.f32 0.5, %v1732_v54  ;;  %1745 = vtanh.f32 %v959_v53  ;;  %v961_v58 = vadd.f32 %v960_v55, %v2251_v61 }
 0x25b   : > { %v1734_v59 = vpop.eup %1733  ;;  %v962_v62 = vpop.f32.mrf.mxu1 }
 0x25c   : > { %1241 = vst [vmem:[%s2265_s13 + $0x100] sm:$0xff] %v1177_v56  ;;  %v1178_v37 = vadd.f32 0.5, %v1114_v57  ;;  %v1115_v4 = vmul.f32 0.5, %v1734_v59  ;;  %1747 = vtanh.f32 %v961_v58  ;;  %v963_v63 = vadd.f32 %v962_v62, %v2249_v60 }
 0x25d   : > { %v1736_v0 = vpop.eup %1735  ;;  %v964_v1 = vpop.f32.mrf.mxu1 }
 0x25e   : > { %1242 = vst [vmem:[%s2265_s13 + $0x108] sm:$0xff] %v1178_v37  ;;  %v1179_v2 = vadd.f32 0.5, %v1115_v4  ;;  %v1116_v3 = vmul.f32 0.5, %v1736_v0  ;;  %1749 = vtanh.f32 %v963_v63  ;;  %v965_v5 = vadd.f32 %v964_v1, %v2251_v61 }
 0x25f   : > { %v1738_v6 = vpop.eup %1737  ;;  %v968_v7 = vpop.f32.mrf.mxu1 }
 0x260   : > { %1243 = vst [vmem:[%s2265_s13 + $0x110] sm:$0xff] %v1179_v2  ;;  %v1180_v8 = vadd.f32 0.5, %v1116_v3  ;;  %v1117_v9 = vmul.f32 0.5, %v1738_v6  ;;  %1751 = vtanh.f32 %v965_v5  ;;  %v969_v10 = vadd.f32 %v968_v7, %v2249_v60 }
 0x261   : > { %v1740_v11 = vpop.eup %1739  ;;  %v970_v12 = vpop.f32.mrf.mxu1 }
 0x262   : > { %1244 = vst [vmem:[%s2265_s13 + $0x118] sm:$0xff] %v1180_v8  ;;  %v1181_v13 = vadd.f32 0.5, %v1117_v9  ;;  %v1118_v14 = vmul.f32 0.5, %v1740_v11  ;;  %1753 = vtanh.f32 %v969_v10  ;;  %v971_v15 = vadd.f32 %v970_v12, %v2251_v61 }
 0x263   : > { %v1742_v16 = vpop.eup %1741  ;;  %v972_v17 = vpop.f32.mrf.mxu1 }
 0x264   : > { %1245 = vst [vmem:[%s2265_s13 + $0x120] sm:$0xff] %v1181_v13  ;;  %v1182_v18 = vadd.f32 0.5, %v1118_v14  ;;  %v1119_v19 = vmul.f32 0.5, %v1742_v16  ;;  %1755 = vtanh.f32 %v971_v15  ;;  %v973_v20 = vadd.f32 %v972_v17, %v2249_v60 }
 0x265   : > { %v1744_v21 = vpop.eup %1743  ;;  %v974_v22 = vpop.f32.mrf.mxu1 }
 0x266   : > { %1246 = vst [vmem:[%s2265_s13 + $0x128] sm:$0xff] %v1182_v18  ;;  %v1183_v23 = vadd.f32 0.5, %v1119_v19  ;;  %v1120_v24 = vmul.f32 0.5, %v1744_v21  ;;  %1757 = vtanh.f32 %v973_v20  ;;  %v975_v25 = vadd.f32 %v974_v22, %v2251_v61 }
 0x267   : > { %v1746_v26 = vpop.eup %1745  ;;  %v978_v27 = vpop.f32.mrf.mxu1 }
 0x268   : > { %1247 = vst [vmem:[%s2265_s13 + $0x130] sm:$0xff] %v1183_v23  ;;  %v1184_v28 = vadd.f32 0.5, %v1120_v24  ;;  %v1121_v29 = vmul.f32 0.5, %v1746_v26  ;;  %1759 = vtanh.f32 %v975_v25  ;;  %v979_v30 = vadd.f32 %v978_v27, %v2249_v60 }
 0x269   : > { %v1748_v31 = vpop.eup %1747  ;;  %v980_v32 = vpop.f32.mrf.mxu1 }
 0x26a   : > { %1248 = vst [vmem:[%s2265_s13 + $0x138] sm:$0xff] %v1184_v28  ;;  %v1185_v33 = vadd.f32 0.5, %v1121_v29  ;;  %v1122_v34 = vmul.f32 0.5, %v1748_v31  ;;  %1761 = vtanh.f32 %v979_v30  ;;  %v981_v35 = vadd.f32 %v980_v32, %v2251_v61 }
 0x26b   : > { %v1750_v36 = vpop.eup %1749  ;;  %v982_v38 = vpop.f32.mrf.mxu1 }
 0x26c   : > { %1249 = vst [vmem:[%s2265_s13 + $0x140] sm:$0xff] %v1185_v33  ;;  %v1186_v39 = vadd.f32 0.5, %v1122_v34  ;;  %v1123_v40 = vmul.f32 0.5, %v1750_v36  ;;  %1763 = vtanh.f32 %v981_v35  ;;  %v983_v41 = vadd.f32 %v982_v38, %v2249_v60 }
 0x26d   : > { %v1752_v42 = vpop.eup %1751  ;;  %v984_v43 = vpop.f32.mrf.mxu1 }
 0x26e   : > { %1250 = vst [vmem:[%s2265_s13 + $0x148] sm:$0xff] %v1186_v39  ;;  %v1187_v44 = vadd.f32 0.5, %v1123_v40  ;;  %v1124_v45 = vmul.f32 0.5, %v1752_v42  ;;  %1765 = vtanh.f32 %v983_v41  ;;  %v985_v46 = vadd.f32 %v984_v43, %v2251_v61 }
 0x26f   : > { %v1754_v47 = vpop.eup %1753  ;;  %v988_v48 = vpop.f32.mrf.mxu1 }
 0x270   : > { %1251 = vst [vmem:[%s2265_s13 + $0x150] sm:$0xff] %v1187_v44  ;;  %v1188_v49 = vadd.f32 0.5, %v1124_v45  ;;  %v1125_v50 = vmul.f32 0.5, %v1754_v47  ;;  %1767 = vtanh.f32 %v985_v46  ;;  %v989_v51 = vadd.f32 %v988_v48, %v2249_v60 }
 0x271   : > { %v1756_v52 = vpop.eup %1755  ;;  %v990_v53 = vpop.f32.mrf.mxu1 }
 0x272   : > { %1252 = vst [vmem:[%s2265_s13 + $0x158] sm:$0xff] %v1188_v49  ;;  %v1189_v54 = vadd.f32 0.5, %v1125_v50  ;;  %v1126_v55 = vmul.f32 0.5, %v1756_v52  ;;  %1769 = vtanh.f32 %v989_v51  ;;  %v991_v56 = vadd.f32 %v990_v53, %v2251_v61 }
 0x273   : > { %v1758_v57 = vpop.eup %1757  ;;  %v992_v58 = vpop.f32.mrf.mxu1 }
 0x274   : > { %1253 = vst [vmem:[%s2265_s13 + $0x160] sm:$0xff] %v1189_v54  ;;  %v1190_v59 = vadd.f32 0.5, %v1126_v55  ;;  %v1127_v62 = vmul.f32 0.5, %v1758_v57  ;;  %1771 = vtanh.f32 %v991_v56  ;;  %v993_v37 = vadd.f32 %v992_v58, %v2249_v60 }
 0x275   : > { %v1760_v4 = vpop.eup %1759  ;;  %v994_v63 = vpop.f32.mrf.mxu1 }
 0x276   : > { %1254 = vst [vmem:[%s2265_s13 + $0x168] sm:$0xff] %v1190_v59  ;;  %v1191_v0 = vadd.f32 0.5, %v1127_v62  ;;  %v1128_v1 = vmul.f32 0.5, %v1760_v4  ;;  %1773 = vtanh.f32 %v993_v37  ;;  %v995_v2 = vadd.f32 %v994_v63, %v2251_v61 }
 0x277   : > { %v1762_v3 = vpop.eup %1761  ;;  %v998_v5 = vpop.f32.mrf.mxu1 }
 0x278   : > { %1255 = vst [vmem:[%s2265_s13 + $0x170] sm:$0xff] %v1191_v0  ;;  %v1192_v6 = vadd.f32 0.5, %v1128_v1  ;;  %v1129_v7 = vmul.f32 0.5, %v1762_v3  ;;  %1775 = vtanh.f32 %v995_v2  ;;  %v999_v8 = vadd.f32 %v998_v5, %v2249_v60 }
 0x279   : > { %v1764_v9 = vpop.eup %1763  ;;  %v1000_v10 = vpop.f32.mrf.mxu1 }
 0x27a   : > { %1256 = vst [vmem:[%s2265_s13 + $0x178] sm:$0xff] %v1192_v6  ;;  %v1193_v11 = vadd.f32 0.5, %v1129_v7  ;;  %v1130_v12 = vmul.f32 0.5, %v1764_v9  ;;  %1777 = vtanh.f32 %v999_v8  ;;  %v1001_v13 = vadd.f32 %v1000_v10, %v2251_v61 }
 0x27b   : > { %v1766_v14 = vpop.eup %1765  ;;  %v1002_v15 = vpop.f32.mrf.mxu1 }
 0x27c   : > { %1257 = vst [vmem:[%s2265_s13 + $0x180] sm:$0xff] %v1193_v11  ;;  %v1194_v16 = vadd.f32 0.5, %v1130_v12  ;;  %v1131_v17 = vmul.f32 0.5, %v1766_v14  ;;  %1779 = vtanh.f32 %v1001_v13  ;;  %v1003_v18 = vadd.f32 %v1002_v15, %v2249_v60 }
 0x27d   : > { %v1768_v19 = vpop.eup %1767  ;;  %v1004_v20 = vpop.f32.mrf.mxu1 }
 0x27e   : > { %1258 = vst [vmem:[%s2265_s13 + $0x188] sm:$0xff] %v1194_v16  ;;  %v1195_v21 = vadd.f32 0.5, %v1131_v17  ;;  %v1132_v22 = vmul.f32 0.5, %v1768_v19  ;;  %1781 = vtanh.f32 %v1003_v18  ;;  %v1005_v23 = vadd.f32 %v1004_v20, %v2251_v61 }
 0x27f   : > { %v1770_v24 = vpop.eup %1769  ;;  %v1008_v25 = vpop.f32.mrf.mxu1 }
 0x280   : > { %1259 = vst [vmem:[%s2265_s13 + $0x190] sm:$0xff] %v1195_v21  ;;  %v1196_v26 = vadd.f32 0.5, %v1132_v22  ;;  %v1133_v27 = vmul.f32 0.5, %v1770_v24  ;;  %1783 = vtanh.f32 %v1005_v23  ;;  %v1009_v28 = vadd.f32 %v1008_v25, %v2249_v60 }
 0x281   : > { %v1772_v29 = vpop.eup %1771  ;;  %v1010_v30 = vpop.f32.mrf.mxu1 }
 0x282   : > { %1260 = vst [vmem:[%s2265_s13 + $0x198] sm:$0xff] %v1196_v26  ;;  %v1197_v31 = vadd.f32 0.5, %v1133_v27  ;;  %v1134_v32 = vmul.f32 0.5, %v1772_v29  ;;  %1785 = vtanh.f32 %v1009_v28  ;;  %v1011_v33 = vadd.f32 %v1010_v30, %v2251_v61 }
 0x283   : > { %v1774_v34 = vpop.eup %1773  ;;  %v1012_v35 = vpop.f32.mrf.mxu1 }
 0x284   : > { %1261 = vst [vmem:[%s2265_s13 + $0x1a0] sm:$0xff] %v1197_v31  ;;  %v1198_v36 = vadd.f32 0.5, %v1134_v32  ;;  %v1135_v38 = vmul.f32 0.5, %v1774_v34  ;;  %1787 = vtanh.f32 %v1011_v33  ;;  %v1013_v39 = vadd.f32 %v1012_v35, %v2249_v60 }
 0x285   : > { %v1776_v40 = vpop.eup %1775  ;;  %v1014_v41 = vpop.f32.mrf.mxu1 }
 0x286   : > { %1262 = vst [vmem:[%s2265_s13 + $0x1a8] sm:$0xff] %v1198_v36  ;;  %v1199_v42 = vadd.f32 0.5, %v1135_v38  ;;  %v1136_v43 = vmul.f32 0.5, %v1776_v40  ;;  %1789 = vtanh.f32 %v1013_v39  ;;  %v1015_v44 = vadd.f32 %v1014_v41, %v2251_v61 }
 0x287   : > { %v1778_v45 = vpop.eup %1777 }
 0x288   : > { %1263 = vst [vmem:[%s2265_s13 + $0x1b0] sm:$0xff] %v1199_v42  ;;  %v1200_v46 = vadd.f32 0.5, %v1136_v43  ;;  %v1137_v47 = vmul.f32 0.5, %v1778_v45  ;;  %1791 = vtanh.f32 %v1015_v44 }
 0x289   : > { %v1780_v48 = vpop.eup %1779 }
 0x28a   : > { %1264 = vst [vmem:[%s2265_s13 + $0x1b8] sm:$0xff] %v1200_v46  ;;  %v1201_v60 = vadd.f32 0.5, %v1137_v47  ;;  %v1138_v49 = vmul.f32 0.5, %v1780_v48 }
 0x28b   : > { %v1782_v50 = vpop.eup %1781 }
 0x28c   : > { %1265 = vst [vmem:[%s2265_s13 + $0x1c0] sm:$0xff] %v1201_v60  ;;  %v1202_v51 = vadd.f32 0.5, %v1138_v49  ;;  %v1139_v52 = vmul.f32 0.5, %v1782_v50 }
 0x28d   : > { %v1784_v53 = vpop.eup %1783 }
 0x28e   : > { %1266 = vst [vmem:[%s2265_s13 + $0x1c8] sm:$0xff] %v1202_v51  ;;  %v1203_v61 = vadd.f32 0.5, %v1139_v52  ;;  %v1140_v54 = vmul.f32 0.5, %v1784_v53 }
 0x28f   : > { %v1786_v55 = vpop.eup %1785 }
 0x290   : > { %1267 = vst [vmem:[%s2265_s13 + $0x1d0] sm:$0xff] %v1203_v61  ;;  %v1204_v56 = vadd.f32 0.5, %v1140_v54  ;;  %v1141_v57 = vmul.f32 0.5, %v1786_v55 }
 0x291   : > { %v1788_v58 = vpop.eup %1787 }
 0x292   : > { %1268 = vst [vmem:[%s2265_s13 + $0x1d8] sm:$0xff] %v1204_v56  ;;  %v1205_v59 = vadd.f32 0.5, %v1141_v57  ;;  %v1142_v62 = vmul.f32 0.5, %v1788_v58 }
 0x293   : > { %v1790_v37 = vpop.eup %1789 }
 0x294   : > { %1269 = vst [vmem:[%s2265_s13 + $0x1e0] sm:$0xff] %v1205_v59  ;;  %v1206_v4 = vadd.f32 0.5, %v1142_v62  ;;  %v1143_v63 = vmul.f32 0.5, %v1790_v37 }
 0x295   : > { %v1792_v0 = vpop.eup %1791 }
 0x296   : > { %1270 = vst [vmem:[%s2265_s13 + $0x1e8] sm:$0xff] %v1206_v4  ;;  %v1207_v1 = vadd.f32 0.5, %v1143_v63  ;;  %v1144_v2 = vmul.f32 0.5, %v1792_v0 }
 0x298   : > { %1271 = vst [vmem:[%s2265_s13 + $0x1f0] sm:$0xff] %v1207_v1  ;;  %v1208_v3 = vadd.f32 0.5, %v1144_v2 }
 0x29a   : > { %1272 = vst [vmem:[%s2265_s13 + $0x1f8] sm:$0xff] %v1208_v3 }
 0x29b   : > { %1886 = shalt.err (!%p1883_p9)
}
 0x29c   : > { %s1887_s6 = scalar_lea.hbm %s2388_s11, 8192  ;;  %s1891_s10 = scalar_lea.hbm %s2440_s5, 16384 }
 0x29d   : > { %p1888_p13 = scmp.ne.s32.totalorder %s2388_s11, %s1887_s6  ;;  %p1892_p4 = scmp.lt.s32.totalorder %s2388_s11, %s2440_s5 }
 0x29e   : > { %p1893_p8 = scmp.lt.s32.totalorder %s1891_s10, %s1887_s6 }
 0x29f   : > { %p1889_p5 = pnand %p1888_p13, %p2456_p10 }
 0x2a0   : > { %p1894_p7 = por %p1893_p8, %p1892_p4 }
 0x2a1   : > { %p1890_p0 = pneg %p1889_p5 }
 0x2a3   : > { %p1895_p11 = pnand %p1894_p7, %p1890_p0 }
 0x2a5   : > { %1898 = shalt.err (!%p1895_p11)
}
 0x2a6   : > { %s1954_s14 = smov 256   ;;  %s1955_s8 = smov 16  }
 0x2a7   : > { %1559 = dma.vmem_to_hbm [thread:$0]  (%p2456_p10), %s2390_s29, 8192, %s2388_s11, %s1274_s15, %s1954_s14, %s1954_s14, %s1955_s8  }
 0x2a8 PF: > { %s1303_s9 = sand.u32 1, %s1929_s18   ;;  %p2457_p1 = scmp.ne.s32.totalorder %s2446_s25, 0 }
 0x2a9   : > { %p2458_p2 = scmp.ge.s32.totalorder %s1941_s21, 2  ;;  %s1304_s22 = scalar_lea.sflag [#allocation4], %s1303_s9 }
 0x2ab   : > { %p1573_p6 = pnand %p2458_p2, %p2457_p1 }
 0x2ad   : > { %p1574_p12 = pneg %p1573_p6 }
 0x2af   : > { %1924 = dma.done.wait (%p1574_p12), %s1304_s22, 8192  }
 0x2b0   : > { %1926 = vsyncadd (%p1574_p12), %s1304_s22, 4294959104  ;;  %p19_p3 = scmp.ge.s32.totalorder %s2058_s17, 4   ;;  %s2459_s18 = smov %s1933_s19 }
 0x2b1   : > { %s2460_s19 = smov %s1937_s20  ;;  %s2461_s20 = smov %s2067_s28 }
 0x2b2   : > { %s2462_s21 = smov %s2058_s17  ;;  %21 = sbr.rel (!%p19_p3) target bundleno = 6 (0x6), region = 93 }
 0x2b7   :  { %1309 = vsyncpa [#allocation3], 1 }
 0x2b8   :  { %1311 = vsyncpa [#allocation3 + $0x1], 1 }
 0x2b9   :  { %1312 = vsyncpa [#allocation6], 1 }
 0x2ba   :  { %1313 = vsyncpa [#allocation4], 1 }
 0x2bb   :  { %1315 = vsyncpa [#allocation4 + $0x1], 1 }

</bundles_post_ra>
